<compile_context>
chip_gen: v7x
topology: tpu7x:2x2x1
jax: 0.10.0
libtpu: 0.0.40
codegen_flags: <defaults>
</compile_context>

<pallas_src>
import functools
import math

import jax
import jax.numpy as jnp
from jax.experimental import pallas as pl
from jax.experimental.pallas import tpu as pltpu


# ---------------------------------------------------------------------------
# Kernel
# ---------------------------------------------------------------------------
def _layernorm_f32(x, g, b, eps=1e-5):
    # LayerNorm computed in float32 (matches the fp32-upcast LayerNorm subclass).
    mu = jnp.mean(x, axis=-1, keepdims=True)
    xc = x - mu
    var = jnp.mean(xc * xc, axis=-1, keepdims=True)
    return xc * jax.lax.rsqrt(var + eps) * g + b


def transformer_kernel(x_ref,
                       g1_ref, b1_ref,
                       wqkv_ref, bqkv_ref,
                       wo_ref, bo_ref,
                       g2_ref, b2_ref,
                       wfc_ref, bfc_ref,
                       wpr_ref, bpr_ref,
                       o_ref,
                       acc_ref,
                       *, n_head):
    """One (batch element, layer) grid step of the residual-attention stack."""
    f32 = jnp.float32
    cdt = wqkv_ref.dtype                       # matmul compute dtype (bf16)

    layer = pl.program_id(1)
    n_layers = pl.num_programs(1)

    # Load the residual stream into the VMEM accumulator at the first layer.
    @pl.when(layer == 0)
    def _():
        acc_ref[...] = x_ref[...]

    x = acc_ref[...]                           # (L, D) f32 residual stream
    L, D = x.shape
    Dh = D // n_head

    # ---- x = x + MHA(LN1(x)) ------------------------------------------------
    # w_qkv is pre-transposed (D, 3D) with head_dim**-0.5 folded into the q third.
    ln1 = _layernorm_f32(x, g1_ref[...], b1_ref[...]).astype(cdt)
    qkv = jnp.dot(ln1, wqkv_ref[...], preferred_element_type=f32) + bqkv_ref[...]

    # bf16 BEFORE the (L, D) -> (H, L, Dh) relayout (halves the bytes moved).
    q = qkv[:, 0 * D:1 * D].astype(cdt)
    k = qkv[:, 1 * D:2 * D].astype(cdt)
    v = qkv[:, 2 * D:3 * D].astype(cdt)
    qh = jnp.transpose(q.reshape(L, n_head, Dh), (1, 0, 2))      # (H, L, Dh) bf16
    kh = jnp.transpose(k.reshape(L, n_head, Dh), (1, 0, 2))
    vh = jnp.transpose(v.reshape(L, n_head, Dh), (1, 0, 2))

    s = jnp.einsum('hqd,hkd->hqk', qh, kh,
                   preferred_element_type=f32)                    # (H, L, L) f32
    s = s - jnp.max(s, axis=-1, keepdims=True)
    p = jnp.exp(s)                                                # f32 softmax
    p = p * pl.reciprocal(jnp.sum(p, axis=-1, keepdims=True), approx=True)
    oh = jnp.einsum('hqk,hkd->hqd', p.astype(cdt), vh,
                    preferred_element_type=f32)                   # (H, L, Dh) f32
    attn = jnp.transpose(oh.astype(cdt), (1, 0, 2)).reshape(L, D)  # bf16 relayout
    attn = jnp.dot(attn, wo_ref[...], preferred_element_type=f32) + bo_ref[...]
    x = x + attn

    # ---- x = x + MLP(LN2(x)) ------------------------------------------------
    ln2 = _layernorm_f32(x, g2_ref[...], b2_ref[...]).astype(cdt)
    h = jnp.dot(ln2, wfc_ref[...], preferred_element_type=f32) + bfc_ref[...]
    h = h * jax.nn.sigmoid(1.702 * h)                             # QuickGELU in f32
    y = jnp.dot(h.astype(cdt), wpr_ref[...], preferred_element_type=f32) + bpr_ref[...]
    x = x + y

    acc_ref[...] = x

    # Write the output block only once per batch element (block index constant in l).
    @pl.when(layer == n_layers - 1)
    def _():
        o_ref[...] = x


# ---------------------------------------------------------------------------
# pallas_call wrapper
# ---------------------------------------------------------------------------
def _vmem_capacity_bytes():
    try:
        return int(pltpu.get_tpu_info().vmem_capacity_bytes)
    except Exception:
        return 128 << 20     # conservative default (v5e/v6e)


def _transformer_pallas(x_nld, stacked_params, n_head):
    """Run the whole residual-attention stack in one pallas_call.

    x_nld: (N, L, D) float32.  stacked_params: tuple of arrays, each with a leading
    `layers` dim, ordered (g1, b1, w_qkv, b_qkv, w_out, b_out, g2, b2, w_fc, b_fc,
    w_pr, b_pr).
    """
    N, L, D = x_nld.shape
    n_layers = int(stacked_params[0].shape[0])

    kern = functools.partial(transformer_kernel, n_head=n_head)

    def wspec(arr):
        rest = tuple(arr.shape[1:])
        zeros = (0,) * len(rest)
        # Leading `layers` dim squeezed; index_map selects the current layer's slab.
        return pl.BlockSpec((None,) + rest, lambda n, l, _z=zeros: (l,) + _z)

    in_specs = [pl.BlockSpec((None, L, D), lambda n, l: (n, 0, 0))]   # activation
    in_specs += [wspec(p) for p in stacked_params]
    out_specs = pl.BlockSpec((None, L, D), lambda n, l: (n, 0, 0))

    # VMEM budget: double-buffered per-layer weights (layer index changes each step),
    # pipelined activation blocks + residual scratch, in-kernel intermediates, margin.
    wbytes_layer = sum((int(p.size) // n_layers) * p.dtype.itemsize
                       for p in stacked_params)
    wbytes = 2 * wbytes_layer
    io_bytes = 5 * L * D * 4                                  # x (x2), out (x2), scratch
    act_bytes = 4 * (12 * L * D + 2 * n_head * L * L + 4 * L * 4 * D)
    cap = int(0.8 * _vmem_capacity_bytes())                   # headroom on 64 MiB v7x
    vmem_limit = int(min(max(wbytes + io_bytes + act_bytes + (4 << 20), 32 << 20), cap))

    return pl.pallas_call(
        kern,
        out_shape=jax.ShapeDtypeStruct((N, L, D), x_nld.dtype),
        grid=(N, n_layers),
        in_specs=in_specs,
        out_specs=out_specs,
        scratch_shapes=[pltpu.VMEM((L, D), jnp.float32)],     # resident residual stream
        compiler_params=pltpu.CompilerParams(
            dimension_semantics=("parallel", "arbitrary"),
            vmem_limit_bytes=vmem_limit),
    )(x_nld, *stacked_params)


@functools.partial(jax.jit, static_argnames=("n_head",))
def transformer_forward(x_lnd, stacked_params, n_head):
    """x_lnd: (L, N, D) as in the PyTorch module.  Returns the same shape."""
    x = jnp.transpose(x_lnd, (1, 0, 2))        # -> (N, L, D)
    x = _transformer_pallas(x, stacked_params, n_head)
    return jnp.transpose(x, (1, 0, 2))         # -> (L, N, D)


# ---------------------------------------------------------------------------
# Parameters: deterministic synthetic init in PyTorch layout, plus a host-side
# preparation step (fused qkv / transposed / scale-folded / bf16 / layer-stacked).
# ---------------------------------------------------------------------------
def init_params(key, width, layers):
    """PyTorch-layout params (nn.MultiheadAttention / nn.Linear / nn.LayerNorm)."""
    D = width
    params = []
    for _ in range(layers):
        key, *ks = jax.random.split(key, 13)
        s = 0.02
        g1 = (1.0 + 0.1 * jax.random.normal(ks[8], (1, D))).astype(jnp.float32)
        b1 = (0.1 * jax.random.normal(ks[9], (1, D))).astype(jnp.float32)
        w_in = (jax.random.normal(ks[0], (3 * D, D)) * s).astype(jnp.float32)
        b_in = (jax.random.normal(ks[1], (1, 3 * D)) * s).astype(jnp.float32)
        w_out = (jax.random.normal(ks[2], (D, D)) * s).astype(jnp.float32)
        b_out = (jax.random.normal(ks[3], (1, D)) * s).astype(jnp.float32)
        g2 = (1.0 + 0.1 * jax.random.normal(ks[10], (1, D))).astype(jnp.float32)
        b2 = (0.1 * jax.random.normal(ks[11], (1, D))).astype(jnp.float32)
        w_fc = (jax.random.normal(ks[4], (4 * D, D)) * s).astype(jnp.float32)
        b_fc = (jax.random.normal(ks[5], (1, 4 * D)) * s).astype(jnp.float32)
        w_pr = (jax.random.normal(ks[6], (D, 4 * D)) * s).astype(jnp.float32)
        b_pr = (jax.random.normal(ks[7], (1, D)) * s).astype(jnp.float32)
        params.append((g1, b1, w_in, b_in, w_out, b_out,
                       g2, b2, w_fc, b_fc, w_pr, b_pr))
    return params


def prepare_kernel_params(torch_params, n_head, compute_dtype=jnp.bfloat16):
    """Fuse qkv, pre-transpose, fold 1/sqrt(Dh) into the q third, cast weights to
    bf16, and stack each parameter across layers (leading `layers` dim)."""
    per_layer = []
    f32 = jnp.float32
    for p in torch_params:
        (g1, b1, w_in, b_in, w_out, b_out, g2, b2, w_fc, b_fc, w_pr, b_pr) = p
        D = g1.shape[-1]
        Dh = D // n_head
        scale = 1.0 / math.sqrt(Dh)
        # Fold the q scaling into the fused (D, 3D) qkv weight / (1, 3D) bias columns.
        scale_vec = jnp.concatenate([jnp.full((D,), scale, f32),
                                     jnp.ones((2 * D,), f32)])
        w_qkv = (w_in.T * scale_vec).astype(compute_dtype)       # (D, 3D)
        b_qkv = (b_in * scale_vec).astype(f32)                   # (1, 3D)
        per_layer.append((
            g1.astype(f32), b1.astype(f32),
            w_qkv, b_qkv,
            w_out.T.astype(compute_dtype), b_out.astype(f32),
            g2.astype(f32), b2.astype(f32),
            w_fc.T.astype(compute_dtype), b_fc.astype(f32),
            w_pr.T.astype(compute_dtype), b_pr.astype(f32),
        ))
    n_fields = len(per_layer[0])
    return tuple(jnp.stack([lp[i] for lp in per_layer], axis=0)
                 for i in range(n_fields))


# ---------------------------------------------------------------------------
# Pure-JAX f32 reference (correctness check)
# ---------------------------------------------------------------------------
def ref_block_single(x, p, n_head):
    (g1, b1, w_in, b_in, w_out, b_out, g2, b2, w_fc, b_fc, w_pr, b_pr) = p
    L, D = x.shape
    Dh = D // n_head

    def ln(z, g, b, eps=1e-5):
        mu = jnp.mean(z, -1, keepdims=True)
        var = jnp.mean((z - mu) ** 2, -1, keepdims=True)
        return (z - mu) / jnp.sqrt(var + eps) * g + b

    h1 = ln(x, g1, b1)
    qkv = h1 @ w_in.T + b_in
    q, k, v = qkv[:, :D] / math.sqrt(Dh), qkv[:, D:2 * D], qkv[:, 2 * D:]
    q = q.reshape(L, n_head, Dh).transpose(1, 0, 2)
    k = k.reshape(L, n_head, Dh).transpose(1, 0, 2)
    v = v.reshape(L, n_head, Dh).transpose(1, 0, 2)
    s = jnp.einsum('hqd,hkd->hqk', q, k)
    pattn = jax.nn.softmax(s, axis=-1)
    o = jnp.einsum('hqk,hkd->hqd', pattn, v).transpose(1, 0, 2).reshape(L, D)
    x = x + (o @ w_out.T + b_out)
    h2 = ln(x, g2, b2)
    m = h2 @ w_fc.T + b_fc
    m = m * jax.nn.sigmoid(1.702 * m)
    return x + (m @ w_pr.T + b_pr)


def ref_forward(x_lnd, params, n_head):
    x = jnp.transpose(x_lnd, (1, 0, 2))
    for p in params:
        x = jax.vmap(lambda xi: ref_block_single(xi, p, n_head))(x)
    return jnp.transpose(x, (1, 0, 2))


# ---------------------------------------------------------------------------
if __name__ == "__main__":
    # Small, lane-aligned correctness shapes (not a benchmark): D=128 keeps the qkv
    # slice boundaries and the MLP widths on 128-lane tiles.
    width, layers, heads = 128, 2, 4
    L, N = 8, 2

    key = jax.random.PRNGKey(0)
    kx, kp = jax.random.split(key)
    x = jax.random.normal(kx, (L, N, width), dtype=jnp.float32)   # (seq, batch, width)

    torch_params = init_params(kp, width, layers)
    kparams = prepare_kernel_params(torch_params, heads, compute_dtype=jnp.bfloat16)

    out = transformer_forward(x, kparams, heads)
    out = jax.block_until_ready(out)

    ref = ref_forward(x, torch_params, heads)
    assert out.shape == (L, N, width)
    max_err = float(jnp.max(jnp.abs(out - ref)))
    # bf16 matmuls with f32 accumulation -> relaxed tolerance vs. the f32 reference.
    assert jnp.allclose(out, ref, atol=2e-2, rtol=2e-2), f"mismatch vs reference: {max_err}"

    print("KERNEL_OK")
</pallas_src>

<mosaic_0001>
module attributes {stable_mosaic.version = 11 : i64} {
  func.func @transformer_kernel(%arg0: i32, %arg1: i32, %arg2: memref<1x8x128xf32, #tpu.memory_space<vmem>>, %arg3: memref<1x1x128xf32, #tpu.memory_space<vmem>>, %arg4: memref<1x1x128xf32, #tpu.memory_space<vmem>>, %arg5: memref<1x128x384xbf16, #tpu.memory_space<vmem>>, %arg6: memref<1x1x384xf32, #tpu.memory_space<vmem>>, %arg7: memref<1x128x128xbf16, #tpu.memory_space<vmem>>, %arg8: memref<1x1x128xf32, #tpu.memory_space<vmem>>, %arg9: memref<1x1x128xf32, #tpu.memory_space<vmem>>, %arg10: memref<1x1x128xf32, #tpu.memory_space<vmem>>, %arg11: memref<1x128x512xbf16, #tpu.memory_space<vmem>>, %arg12: memref<1x1x512xf32, #tpu.memory_space<vmem>>, %arg13: memref<1x512x128xbf16, #tpu.memory_space<vmem>>, %arg14: memref<1x1x128xf32, #tpu.memory_space<vmem>>, %arg15: memref<1x8x128xf32, #tpu.memory_space<vmem>>, %arg16: memref<8x128xf32, #tpu.memory_space<vmem>>) attributes {dimension_semantics = [#tpu.dimension_semantics<parallel>, #tpu.dimension_semantics<arbitrary>], iteration_bounds = array<i64: 2, 2>, scalar_prefetch = 0 : i64, scratch_operands = 1 : i64, tpu.core_type = #tpu.core_type<tc>, window_params = [{transform_indices = @transform_0, window_bounds = array<i64: 1, 8, 128>}, {transform_indices = @transform_1, window_bounds = array<i64: 1, 1, 128>}, {transform_indices = @transform_2, window_bounds = array<i64: 1, 1, 128>}, {transform_indices = @transform_3, window_bounds = array<i64: 1, 128, 384>}, {transform_indices = @transform_4, window_bounds = array<i64: 1, 1, 384>}, {transform_indices = @transform_5, window_bounds = array<i64: 1, 128, 128>}, {transform_indices = @transform_6, window_bounds = array<i64: 1, 1, 128>}, {transform_indices = @transform_7, window_bounds = array<i64: 1, 1, 128>}, {transform_indices = @transform_8, window_bounds = array<i64: 1, 1, 128>}, {transform_indices = @transform_9, window_bounds = array<i64: 1, 128, 512>}, {transform_indices = @transform_10, window_bounds = array<i64: 1, 1, 512>}, {transform_indices = @transform_11, window_bounds = array<i64: 1, 512, 128>}, {transform_indices = @transform_12, window_bounds = array<i64: 1, 1, 128>}, {transform_indices = @transform_13, window_bounds = array<i64: 1, 8, 128>}]} {
    %c0_i32 = arith.constant 0 : i32
    %0 = arith.cmpi eq, %arg1, %c0_i32 : i32
    %1 = arith.extui %0 : i1 to i32
    %c0_i32_0 = arith.constant 0 : i32
    %2 = arith.cmpi ne, %1, %c0_i32_0 : i32
    scf.if %2 {
      %c0_60 = arith.constant 0 : index
      %c0_61 = arith.constant 0 : index
      %c0_62 = arith.constant 0 : index
      %125 = vector.load %arg2[%c0_60, %c0_61, %c0_62] : memref<1x8x128xf32, #tpu.memory_space<vmem>>, vector<1x8x128xf32>
      %126 = vector.shape_cast %125 : vector<1x8x128xf32> to vector<8x128xf32>
      %c0_63 = arith.constant 0 : index
      %c0_64 = arith.constant 0 : index
      %127 = vector.load %arg16[%c0_63, %c0_64] : memref<8x128xf32, #tpu.memory_space<vmem>>, vector<8x128xf32>
      tpu.vector_store %arg16[%c0_63, %c0_64], %126 {strides = array<i32>} : memref<8x128xf32, #tpu.memory_space<vmem>>, vector<8x128xf32>,
    } else {
    }
    %c0 = arith.constant 0 : index
    %c0_1 = arith.constant 0 : index
    %3 = vector.load %arg16[%c0, %c0_1] : memref<8x128xf32, #tpu.memory_space<vmem>>, vector<8x128xf32>
    %c0_2 = arith.constant 0 : index
    %c0_3 = arith.constant 0 : index
    %c0_4 = arith.constant 0 : index
    %4 = vector.load %arg3[%c0_2, %c0_3, %c0_4] : memref<1x1x128xf32, #tpu.memory_space<vmem>>, vector<1x1x128xf32>
    %5 = vector.shape_cast %4 : vector<1x1x128xf32> to vector<1x128xf32>
    %c0_5 = arith.constant 0 : index
    %c0_6 = arith.constant 0 : index
    %c0_7 = arith.constant 0 : index
    %6 = vector.load %arg4[%c0_5, %c0_6, %c0_7] : memref<1x1x128xf32, #tpu.memory_space<vmem>>, vector<1x1x128xf32>
    %7 = vector.shape_cast %6 : vector<1x1x128xf32> to vector<1x128xf32>
    %cst = arith.constant dense<0.000000e+00> : vector<8xf32>
    %8 = vector.multi_reduction <add>, %3, %cst [1] : vector<8x128xf32> to vector<8xf32>
    %9 = vector.shape_cast %8 : vector<8xf32> to vector<8x1xf32>
    %cst_8 = arith.constant 1.280000e+02 : f32
    %10 = vector.broadcast %cst_8 : f32 to vector<8x1xf32>
    %11 = arith.divf %9, %10 : vector<8x1xf32>
    %12 = vector.broadcast %11 : vector<8x1xf32> to vector<8x128xf32>
    %13 = arith.subf %3, %12 : vector<8x128xf32>
    %14 = arith.mulf %13, %13 : vector<8x128xf32>
    %cst_9 = arith.constant dense<0.000000e+00> : vector<8xf32>
    %15 = vector.multi_reduction <add>, %14, %cst_9 [1] : vector<8x128xf32> to vector<8xf32>
    %16 = vector.shape_cast %15 : vector<8xf32> to vector<8x1xf32>
    %cst_10 = arith.constant 1.280000e+02 : f32
    %17 = vector.broadcast %cst_10 : f32 to vector<8x1xf32>
    %18 = arith.divf %16, %17 : vector<8x1xf32>
    %cst_11 = arith.constant 9.99999974E-6 : f32
    %19 = vector.broadcast %cst_11 : f32 to vector<8x1xf32>
    %20 = arith.addf %18, %19 : vector<8x1xf32>
    %21 = math.rsqrt %20 : vector<8x1xf32>
    %22 = vector.broadcast %21 : vector<8x1xf32> to vector<8x128xf32>
    %23 = arith.mulf %13, %22 : vector<8x128xf32>
    %24 = vector.broadcast %5 : vector<1x128xf32> to vector<8x128xf32>
    %25 = arith.mulf %23, %24 : vector<8x128xf32>
    %26 = vector.broadcast %7 : vector<1x128xf32> to vector<8x128xf32>
    %27 = arith.addf %25, %26 : vector<8x128xf32>
    %28 = arith.truncf %27 : vector<8x128xf32> to vector<8x128xbf16>
    %c0_12 = arith.constant 0 : index
    %c0_13 = arith.constant 0 : index
    %c0_14 = arith.constant 0 : index
    %29 = vector.load %arg5[%c0_12, %c0_13, %c0_14] : memref<1x128x384xbf16, #tpu.memory_space<vmem>>, vector<1x128x384xbf16>
    %30 = vector.shape_cast %29 : vector<1x128x384xbf16> to vector<128x384xbf16>
    %cst_15 = arith.constant dense<0.000000e+00> : vector<8x384xf32>
    %31 = tpu.matmul %28, %30, %cst_15 {dimension_numbers = #tpu.dot_dimension_numbers<[1], [0], [0], [1], [0, 0, 1, 1], [], []>} : vector<8x128xbf16>, vector<128x384xbf16>, vector<8x384xf32> -> vector<8x384xf32>
    %c0_16 = arith.constant 0 : index
    %c0_17 = arith.constant 0 : index
    %c0_18 = arith.constant 0 : index
    %32 = vector.load %arg6[%c0_16, %c0_17, %c0_18] : memref<1x1x384xf32, #tpu.memory_space<vmem>>, vector<1x1x384xf32>
    %33 = vector.shape_cast %32 : vector<1x1x384xf32> to vector<1x384xf32>
    %34 = vector.broadcast %33 : vector<1x384xf32> to vector<8x384xf32>
    %35 = arith.addf %31, %34 : vector<8x384xf32>
    %36 = vector.extract_strided_slice %35 {offsets = [0, 0], sizes = [8, 128], strides = [1, 1]} : vector<8x384xf32> to vector<8x128xf32>
    %37 = arith.truncf %36 : vector<8x128xf32> to vector<8x128xbf16>
    %38 = vector.extract_strided_slice %35 {offsets = [0, 128], sizes = [8, 128], strides = [1, 1]} : vector<8x384xf32> to vector<8x128xf32>
    %39 = arith.truncf %38 : vector<8x128xf32> to vector<8x128xbf16>
    %40 = vector.extract_strided_slice %35 {offsets = [0, 256], sizes = [8, 128], strides = [1, 1]} : vector<8x384xf32> to vector<8x128xf32>
    %41 = arith.truncf %40 : vector<8x128xf32> to vector<8x128xbf16>
    %42 = vector.shape_cast %37 : vector<8x128xbf16> to vector<8x4x32xbf16>
    %43 = tpu.transpose %42, [1, 0, 2] : vector<8x4x32xbf16> -> vector<4x8x32xbf16>
    %44 = vector.shape_cast %39 : vector<8x128xbf16> to vector<8x4x32xbf16>
    %45 = tpu.transpose %44, [1, 0, 2] : vector<8x4x32xbf16> -> vector<4x8x32xbf16>
    %46 = vector.shape_cast %41 : vector<8x128xbf16> to vector<8x4x32xbf16>
    %47 = tpu.transpose %46, [1, 0, 2] : vector<8x4x32xbf16> -> vector<4x8x32xbf16>
    "tpu.trace_start"() <{level = 10 : i32, message = "hqd,hkd->hqk"}> : () -> ()
    %cst_19 = arith.constant dense<0.000000e+00> : vector<4x8x8xf32>
    %48 = tpu.matmul %43, %45, %cst_19 {dimension_numbers = #tpu.dot_dimension_numbers<[2], [2], [1], [1], [0, 0, 0, 1, 1, 1], [0], [0]>} : vector<4x8x32xbf16>, vector<4x8x32xbf16>, vector<4x8x8xf32> -> vector<4x8x8xf32>
    "tpu.trace_stop"() : () -> ()
    %cst_20 = arith.constant dense<0xFF800000> : vector<4x8xf32>
    %49 = vector.multi_reduction <maximumf>, %48, %cst_20 [2] : vector<4x8x8xf32> to vector<4x8xf32>
    %50 = vector.shape_cast %49 : vector<4x8xf32> to vector<4x8x1xf32>
    %51 = vector.broadcast %50 : vector<4x8x1xf32> to vector<4x8x8xf32>
    %52 = arith.subf %48, %51 : vector<4x8x8xf32>
    %53 = math.exp %52 : vector<4x8x8xf32>
    %cst_21 = arith.constant dense<0.000000e+00> : vector<4x8xf32>
    %54 = vector.multi_reduction <add>, %53, %cst_21 [2] : vector<4x8x8xf32> to vector<4x8xf32>
    %55 = vector.shape_cast %54 : vector<4x8xf32> to vector<4x8x1xf32>
    %56 = tpu.reciprocal %55 {approx = true} : vector<4x8x1xf32> -> vector<4x8x1xf32>
    %57 = vector.broadcast %56 : vector<4x8x1xf32> to vector<4x8x8xf32>
    %58 = arith.mulf %53, %57 : vector<4x8x8xf32>
    %59 = arith.truncf %58 : vector<4x8x8xf32> to vector<4x8x8xbf16>
    "tpu.trace_start"() <{level = 10 : i32, message = "hqk,hkd->hqd"}> : () -> ()
    %cst_22 = arith.constant dense<0.000000e+00> : vector<4x8x32xf32>
    %60 = tpu.matmul %59, %47, %cst_22 {dimension_numbers = #tpu.dot_dimension_numbers<[2], [1], [1], [2], [0, 0, 0, 1, 1, 2], [0], [0]>} : vector<4x8x8xbf16>, vector<4x8x32xbf16>, vector<4x8x32xf32> -> vector<4x8x32xf32>
    "tpu.trace_stop"() : () -> ()
    %61 = arith.truncf %60 : vector<4x8x32xf32> to vector<4x8x32xbf16>
    %62 = tpu.transpose %61, [1, 0, 2] : vector<4x8x32xbf16> -> vector<8x4x32xbf16>
    %63 = vector.shape_cast %62 : vector<8x4x32xbf16> to vector<8x128xbf16>
    %c0_23 = arith.constant 0 : index
    %c0_24 = arith.constant 0 : index
    %c0_25 = arith.constant 0 : index
    %64 = vector.load %arg7[%c0_23, %c0_24, %c0_25] : memref<1x128x128xbf16, #tpu.memory_space<vmem>>, vector<1x128x128xbf16>
    %65 = vector.shape_cast %64 : vector<1x128x128xbf16> to vector<128x128xbf16>
    %cst_26 = arith.constant dense<0.000000e+00> : vector<8x128xf32>
    %66 = tpu.matmul %63, %65, %cst_26 {dimension_numbers = #tpu.dot_dimension_numbers<[1], [0], [0], [1], [0, 0, 1, 1], [], []>} : vector<8x128xbf16>, vector<128x128xbf16>, vector<8x128xf32> -> vector<8x128xf32>
    %c0_27 = arith.constant 0 : index
    %c0_28 = arith.constant 0 : index
    %c0_29 = arith.constant 0 : index
    %67 = vector.load %arg8[%c0_27, %c0_28, %c0_29] : memref<1x1x128xf32, #tpu.memory_space<vmem>>, vector<1x1x128xf32>
    %68 = vector.shape_cast %67 : vector<1x1x128xf32> to vector<1x128xf32>
    %69 = vector.broadcast %68 : vector<1x128xf32> to vector<8x128xf32>
    %70 = arith.addf %66, %69 : vector<8x128xf32>
    %71 = arith.addf %3, %70 : vector<8x128xf32>
    %c0_30 = arith.constant 0 : index
    %c0_31 = arith.constant 0 : index
    %c0_32 = arith.constant 0 : index
    %72 = vector.load %arg9[%c0_30, %c0_31, %c0_32] : memref<1x1x128xf32, #tpu.memory_space<vmem>>, vector<1x1x128xf32>
    %73 = vector.shape_cast %72 : vector<1x1x128xf32> to vector<1x128xf32>
    %c0_33 = arith.constant 0 : index
    %c0_34 = arith.constant 0 : index
    %c0_35 = arith.constant 0 : index
    %74 = vector.load %arg10[%c0_33, %c0_34, %c0_35] : memref<1x1x128xf32, #tpu.memory_space<vmem>>, vector<1x1x128xf32>
    %75 = vector.shape_cast %74 : vector<1x1x128xf32> to vector<1x128xf32>
    %cst_36 = arith.constant dense<0.000000e+00> : vector<8xf32>
    %76 = vector.multi_reduction <add>, %71, %cst_36 [1] : vector<8x128xf32> to vector<8xf32>
    %77 = vector.shape_cast %76 : vector<8xf32> to vector<8x1xf32>
    %cst_37 = arith.constant 1.280000e+02 : f32
    %78 = vector.broadcast %cst_37 : f32 to vector<8x1xf32>
    %79 = arith.divf %77, %78 : vector<8x1xf32>
    %80 = vector.broadcast %79 : vector<8x1xf32> to vector<8x128xf32>
    %81 = arith.subf %71, %80 : vector<8x128xf32>
    %82 = arith.mulf %81, %81 : vector<8x128xf32>
    %cst_38 = arith.constant dense<0.000000e+00> : vector<8xf32>
    %83 = vector.multi_reduction <add>, %82, %cst_38 [1] : vector<8x128xf32> to vector<8xf32>
    %84 = vector.shape_cast %83 : vector<8xf32> to vector<8x1xf32>
    %cst_39 = arith.constant 1.280000e+02 : f32
    %85 = vector.broadcast %cst_39 : f32 to vector<8x1xf32>
    %86 = arith.divf %84, %85 : vector<8x1xf32>
    %cst_40 = arith.constant 9.99999974E-6 : f32
    %87 = vector.broadcast %cst_40 : f32 to vector<8x1xf32>
    %88 = arith.addf %86, %87 : vector<8x1xf32>
    %89 = math.rsqrt %88 : vector<8x1xf32>
    %90 = vector.broadcast %89 : vector<8x1xf32> to vector<8x128xf32>
    %91 = arith.mulf %81, %90 : vector<8x128xf32>
    %92 = vector.broadcast %73 : vector<1x128xf32> to vector<8x128xf32>
    %93 = arith.mulf %91, %92 : vector<8x128xf32>
    %94 = vector.broadcast %75 : vector<1x128xf32> to vector<8x128xf32>
    %95 = arith.addf %93, %94 : vector<8x128xf32>
    %96 = arith.truncf %95 : vector<8x128xf32> to vector<8x128xbf16>
    %c0_41 = arith.constant 0 : index
    %c0_42 = arith.constant 0 : index
    %c0_43 = arith.constant 0 : index
    %97 = vector.load %arg11[%c0_41, %c0_42, %c0_43] : memref<1x128x512xbf16, #tpu.memory_space<vmem>>, vector<1x128x512xbf16>
    %98 = vector.shape_cast %97 : vector<1x128x512xbf16> to vector<128x512xbf16>
    %cst_44 = arith.constant dense<0.000000e+00> : vector<8x512xf32>
    %99 = tpu.matmul %96, %98, %cst_44 {dimension_numbers = #tpu.dot_dimension_numbers<[1], [0], [0], [1], [0, 0, 1, 1], [], []>} : vector<8x128xbf16>, vector<128x512xbf16>, vector<8x512xf32> -> vector<8x512xf32>
    %c0_45 = arith.constant 0 : index
    %c0_46 = arith.constant 0 : index
    %c0_47 = arith.constant 0 : index
    %100 = vector.load %arg12[%c0_45, %c0_46, %c0_47] : memref<1x1x512xf32, #tpu.memory_space<vmem>>, vector<1x1x512xf32>
    %101 = vector.shape_cast %100 : vector<1x1x512xf32> to vector<1x512xf32>
    %102 = vector.broadcast %101 : vector<1x512xf32> to vector<8x512xf32>
    %103 = arith.addf %99, %102 : vector<8x512xf32>
    %cst_48 = arith.constant 1.702000e+00 : f32
    %104 = vector.broadcast %cst_48 : f32 to vector<8x512xf32>
    %105 = arith.mulf %104, %103 : vector<8x512xf32>
    %106 = arith.negf %105 : vector<8x512xf32>
    %107 = math.exp %106 : vector<8x512xf32>
    %cst_49 = arith.constant 1.000000e+00 : f32
    %108 = vector.broadcast %cst_49 : f32 to vector<8x512xf32>
    %109 = arith.addf %108, %107 : vector<8x512xf32>
    %110 = arith.divf %108, %109 : vector<8x512xf32>
    %111 = arith.mulf %103, %110 : vector<8x512xf32>
    %112 = arith.truncf %111 : vector<8x512xf32> to vector<8x512xbf16>
    %c0_50 = arith.constant 0 : index
    %c0_51 = arith.constant 0 : index
    %c0_52 = arith.constant 0 : index
    %113 = vector.load %arg13[%c0_50, %c0_51, %c0_52] : memref<1x512x128xbf16, #tpu.memory_space<vmem>>, vector<1x512x128xbf16>
    %114 = vector.shape_cast %113 : vector<1x512x128xbf16> to vector<512x128xbf16>
    %cst_53 = arith.constant dense<0.000000e+00> : vector<8x128xf32>
    %115 = tpu.matmul %112, %114, %cst_53 {dimension_numbers = #tpu.dot_dimension_numbers<[1], [0], [0], [1], [0, 0, 1, 1], [], []>} : vector<8x512xbf16>, vector<512x128xbf16>, vector<8x128xf32> -> vector<8x128xf32>
    %c0_54 = arith.constant 0 : index
    %c0_55 = arith.constant 0 : index
    %c0_56 = arith.constant 0 : index
    %116 = vector.load %arg14[%c0_54, %c0_55, %c0_56] : memref<1x1x128xf32, #tpu.memory_space<vmem>>, vector<1x1x128xf32>
    %117 = vector.shape_cast %116 : vector<1x1x128xf32> to vector<1x128xf32>
    %118 = vector.broadcast %117 : vector<1x128xf32> to vector<8x128xf32>
    %119 = arith.addf %115, %118 : vector<8x128xf32>
    %120 = arith.addf %71, %119 : vector<8x128xf32>
    %c0_57 = arith.constant 0 : index
    %c0_58 = arith.constant 0 : index
    %121 = vector.load %arg16[%c0_57, %c0_58] : memref<8x128xf32, #tpu.memory_space<vmem>>, vector<8x128xf32>
    tpu.vector_store %arg16[%c0_57, %c0_58], %120 {strides = array<i32>} : memref<8x128xf32, #tpu.memory_space<vmem>>, vector<8x128xf32>,
    %c1_i32 = arith.constant 1 : i32
    %122 = arith.cmpi eq, %arg1, %c1_i32 : i32
    %123 = arith.extui %122 : i1 to i32
    %c0_i32_59 = arith.constant 0 : i32
    %124 = arith.cmpi ne, %123, %c0_i32_59 : i32
    scf.if %124 {
      %c0_60 = arith.constant 0 : index
      %c0_61 = arith.constant 0 : index
      %c0_62 = arith.constant 0 : index
      %125 = vector.load %arg15[%c0_60, %c0_61, %c0_62] : memref<1x8x128xf32, #tpu.memory_space<vmem>>, vector<1x8x128xf32>
      %126 = vector.shape_cast %125 : vector<1x8x128xf32> to vector<8x128xf32>
      %127 = vector.shape_cast %120 : vector<8x128xf32> to vector<1x8x128xf32>
      tpu.vector_store %arg15[%c0_60, %c0_61, %c0_62], %127 {strides = array<i32>} : memref<1x8x128xf32, #tpu.memory_space<vmem>>, vector<1x8x128xf32>,
    } else {
    }
    return
  }
  func.func @transform_0(%arg0: i32, %arg1: i32) -> (i32, i32, i32) {
    %c0_i32 = arith.constant 0 : i32
    %c0_i32_0 = arith.constant 0 : i32
    %c0_i32_1 = arith.constant 0 : i32
    return %arg0, %c0_i32, %c0_i32_0 : i32, i32, i32
  }
  func.func @transform_1(%arg0: i32, %arg1: i32) -> (i32, i32, i32) {
    %c0_i32 = arith.constant 0 : i32
    %c0_i32_0 = arith.constant 0 : i32
    %c0_i32_1 = arith.constant 0 : i32
    return %arg1, %c0_i32, %c0_i32_0 : i32, i32, i32
  }
  func.func @transform_2(%arg0: i32, %arg1: i32) -> (i32, i32, i32) {
    %c0_i32 = arith.constant 0 : i32
    %c0_i32_0 = arith.constant 0 : i32
    %c0_i32_1 = arith.constant 0 : i32
    return %arg1, %c0_i32, %c0_i32_0 : i32, i32, i32
  }
  func.func @transform_3(%arg0: i32, %arg1: i32) -> (i32, i32, i32) {
    %c0_i32 = arith.constant 0 : i32
    %c0_i32_0 = arith.constant 0 : i32
    %c0_i32_1 = arith.constant 0 : i32
    return %arg1, %c0_i32, %c0_i32_0 : i32, i32, i32
  }
  func.func @transform_4(%arg0: i32, %arg1: i32) -> (i32, i32, i32) {
    %c0_i32 = arith.constant 0 : i32
    %c0_i32_0 = arith.constant 0 : i32
    %c0_i32_1 = arith.constant 0 : i32
    return %arg1, %c0_i32, %c0_i32_0 : i32, i32, i32
  }
  func.func @transform_5(%arg0: i32, %arg1: i32) -> (i32, i32, i32) {
    %c0_i32 = arith.constant 0 : i32
    %c0_i32_0 = arith.constant 0 : i32
    %c0_i32_1 = arith.constant 0 : i32
    return %arg1, %c0_i32, %c0_i32_0 : i32, i32, i32
  }
  func.func @transform_6(%arg0: i32, %arg1: i32) -> (i32, i32, i32) {
    %c0_i32 = arith.constant 0 : i32
    %c0_i32_0 = arith.constant 0 : i32
    %c0_i32_1 = arith.constant 0 : i32
    return %arg1, %c0_i32, %c0_i32_0 : i32, i32, i32
  }
  func.func @transform_7(%arg0: i32, %arg1: i32) -> (i32, i32, i32) {
    %c0_i32 = arith.constant 0 : i32
    %c0_i32_0 = arith.constant 0 : i32
    %c0_i32_1 = arith.constant 0 : i32
    return %arg1, %c0_i32, %c0_i32_0 : i32, i32, i32
  }
  func.func @transform_8(%arg0: i32, %arg1: i32) -> (i32, i32, i32) {
    %c0_i32 = arith.constant 0 : i32
    %c0_i32_0 = arith.constant 0 : i32
    %c0_i32_1 = arith.constant 0 : i32
    return %arg1, %c0_i32, %c0_i32_0 : i32, i32, i32
  }
  func.func @transform_9(%arg0: i32, %arg1: i32) -> (i32, i32, i32) {
    %c0_i32 = arith.constant 0 : i32
    %c0_i32_0 = arith.constant 0 : i32
    %c0_i32_1 = arith.constant 0 : i32
    return %arg1, %c0_i32, %c0_i32_0 : i32, i32, i32
  }
  func.func @transform_10(%arg0: i32, %arg1: i32) -> (i32, i32, i32) {
    %c0_i32 = arith.constant 0 : i32
    %c0_i32_0 = arith.constant 0 : i32
    %c0_i32_1 = arith.constant 0 : i32
    return %arg1, %c0_i32, %c0_i32_0 : i32, i32, i32
  }
  func.func @transform_11(%arg0: i32, %arg1: i32) -> (i32, i32, i32) {
    %c0_i32 = arith.constant 0 : i32
    %c0_i32_0 = arith.constant 0 : i32
    %c0_i32_1 = arith.constant 0 : i32
    return %arg1, %c0_i32, %c0_i32_0 : i32, i32, i32
  }
  func.func @transform_12(%arg0: i32, %arg1: i32) -> (i32, i32, i32) {
    %c0_i32 = arith.constant 0 : i32
    %c0_i32_0 = arith.constant 0 : i32
    %c0_i32_1 = arith.constant 0 : i32
    return %arg1, %c0_i32, %c0_i32_0 : i32, i32, i32
  }
  func.func @transform_13(%arg0: i32, %arg1: i32) -> (i32, i32, i32) {
    %c0_i32 = arith.constant 0 : i32
    %c0_i32_0 = arith.constant 0 : i32
    %c0_i32_1 = arith.constant 0 : i32
    return %arg0, %c0_i32, %c0_i32_0 : i32, i32, i32
  }
}

</mosaic_0001>

<bundles_post_ra>
// kernel: transformer_forward.1
= control target key start
LH: loop header
LB: loop body
LE: loop exit
PB: predicated region body
PF: predicated region fallthrough
CT: control target
= control target key end

     0   :  { %s4703_s0 = inlined_call_operand.vmem [shape: f32[2,8,128], index: 0, kind: input, shape index: {}]   ;;  %s4704_s1 = inlined_call_operand.vmem [shape: f32[2,1,128], index: 1, kind: input, shape index: {}]   ;;  %s4705_s2 = inlined_call_operand.vmem [shape: f32[2,1,128], index: 2, kind: input, shape index: {}]   ;;  %s4706_s3 = inlined_call_operand.hbm [shape: bf16[2,128,384], index: 3, kind: input, shape index: {}]   ;;  %s4707_s4 = inlined_call_operand.vmem [shape: f32[2,1,384], index: 4, kind: input, shape index: {}]   ;;  %s4708_s5 = inlined_call_operand.hbm [shape: bf16[2,128,128], index: 5, kind: input, shape index: {}]   ;;  %s4709_s6 = inlined_call_operand.vmem [shape: f32[2,1,128], index: 6, kind: input, shape index: {}]   ;;  %s4710_s7 = inlined_call_operand.vmem [shape: f32[2,1,128], index: 7, kind: input, shape index: {}]   ;;  %s4711_s8 = inlined_call_operand.vmem [shape: f32[2,1,128], index: 8, kind: input, shape index: {}]   ;;  %s4712_s9 = inlined_call_operand.hbm [shape: bf16[2,128,512], index: 9, kind: input, shape index: {}]   ;;  %s4713_s10 = inlined_call_operand.vmem [shape: f32[2,1,512], index: 10, kind: input, shape index: {}]   ;;  %s4714_s11 = inlined_call_operand.hbm [shape: bf16[2,512,128], index: 11, kind: input, shape index: {}]   ;;  %s4715_s12 = inlined_call_operand.vmem [shape: f32[2,1,128], index: 12, kind: input, shape index: {}]   ;;  %s4716_s13 = inlined_call_operand.vmem [shape: f32[2,8,128], index: 13, kind: output, shape index: {}]  }
   0x1   :  { %4728 = sst [smem:[#allocation22_spill]] %s4703_s0 }
   0x2   :  { %4729 = sst [smem:[#allocation23_spill]] %s4706_s3 }
   0x3   :  { %4730 = sst [smem:[#allocation24_spill]] %s4707_s4 }
   0x4   :  { %4731 = sst [smem:[#allocation25_spill]] %s4708_s5 }
   0x5   :  { %4732 = sst [smem:[#allocation26_spill]] %s4709_s6 }
   0x6   :  { %4733 = sst [smem:[#allocation27_spill]] %s4711_s8 }
   0x7   :  { %4734 = sst [smem:[#allocation28_spill]] %s4712_s9 }
   0x8   :  { %4735 = sst [smem:[#allocation29_spill]] %s4713_s10 }
   0x9   :  { %4736 = sst [smem:[#allocation30_spill]] %s4714_s11 }
   0xa   :  { %4737 = sst [smem:[#allocation31_spill]] %s4715_s12 }
   0xb   :  { %4738 = sst [smem:[#allocation32_spill]] %s4716_s13 }
   0xc   :  { %18 = vsyncpa [#allocation4], 0 }
   0xd   :  { %20 = vsyncpa [#allocation4 + $0x1], 0 }
   0xe   :  { %21 = vsyncpa [#allocation6], 0 }
   0xf   :  { %23 = vsyncpa [#allocation6 + $0x1], 0 }
  0x10   :  { %24 = vsyncpa [#allocation9], 0 }
  0x11   :  { %26 = vsyncpa [#allocation9 + $0x1], 0  ;;  %s4029_s25 = smov 0   ;;  %s4031_s26 = smov 0  }
  0x12   :  { %s4033_s27 = smov 0   ;;  %s4035_s28 = smov 0  }
  0x13   :  { %s4037_s29 = smov 0   ;;  %s4039_s30 = smov 0  }
  0x14   :  { %s4041_s14 = smov 0   ;;  %s4043_s15 = smov 0  }
  0x15 LB: > { %4739 = sst [smem:[#allocation13_spill]] %s3915_s26  ;;  %s4718_s16 = sadd.s32 4294967295, %s3939_s15   ;;  %s3939_s15 = sphi %s4043_s15, %s32_s15   ;;  %s3935_s14 = sphi %s4041_s14, %s4784_s14   ;;  %s3931_s30 = sphi %s4039_s30, %s4783_s30   ;;  %s3927_s29 = sphi %s4037_s29, %s4782_s29   ;;  %s3923_s28 = sphi %s4035_s28, %s4781_s28   ;;  %s3919_s27 = sphi %s4033_s27, %s4780_s27   ;;  %s3915_s26 = sphi %s4031_s26, %s4779_s26   ;;  %s3911_s25 = sphi %s4029_s25, %s4778_s25  }
  0x16   : > { %4740 = sst [smem:[#allocation14_spill]] %s3919_s27  ;;  %s41_s17 = sadd.s32 1, %s3931_s30 }
  0x17   : > { %4741 = sst [smem:[#allocation15_spill]] %s3931_s30  ;;  %p42_p0 = scmp.ge.s32.totalorder %s41_s17, 2 }
  0x18   : > { %4742 = sst [smem:[#allocation16_spill]] %s3935_s14  ;;  %s44_s18 = sadd.s32 1, %s3935_s14 }
  0x19   : > { %4743 = sst [smem:[#allocation17_spill]] %s3939_s15  ;;  %s129_s19 = sadd.s32 1, %s3919_s27 }
  0x1a   : > { %p136_p1 = scmp.ne.s32.totalorder %s3919_s27, %s3915_s26  ;;  %s4786_s17 = smov (%p42_p0, %s41_s17), 0 }
  0x1b   : > { %4744 = sst [smem:[#allocation18_spill]] %s4786_s17  ;;  %s4788_s18 = smov (!%p42_p0, %s44_s18), %s3935_s14 }
  0x1c   : > { %s126_s20 = ssub.s32 %s3931_s30, %s4786_s17  ;;  %p137_p2 = scmp.eq.s32.totalorder %s3939_s15, 0 }
  0x1d   : > { %p46_p3 = scmp.ge.s32.totalorder %s4788_s18, 2  ;;  %p127_p4 = scmp.eq.s32.totalorder %s126_s20, 0 }
  0x1e   : > { %p138_p5 = por %p137_p2, %p136_p1  ;;  %p142_p6 = scmp.ne.s32.totalorder %s3915_s26, %s3911_s25 }
  0x1f   : > { %s4790_s18 = smov (%p46_p3, %s4788_s18), 0  ;;  %p143_p7 = scmp.eq.s32.totalorder %s4718_s16, 0 }
  0x20   : > { %4745 = sst [smem:[#allocation19_spill]] %s4790_s18  ;;  %p3509_p8 = scmp.lt.s32.totalorder %s3939_s15, 4 }
  0x21   : > { %s4083_s21 = scalar_select %p127_p4, %s3919_s27, %s129_s19  }
  0x22   : > { %s4089_s22 = sand.u32 1, %s3919_s27   ;;  %p4091_p9 = por %p143_p7, %p142_p6 }
  0x23   : > { %4746 = sst [smem:[#allocation20_spill]] %s4083_s21  ;;  %s473_s24 = sand.u32 1, %s3939_s15  }
  0x24   : > { %s4747_s23 = scalar_select %p4091_p9, 1, 0 }
  0x25   : > { %p4096_p10 = pnand %p3509_p8, %p138_p5  ;;  %s3181_s25 = sshll.u32 %s4089_s22, 6 }
  0x26   : > { %s3315_s18 = sshll.u32 %s3931_s30, 10  ;;  %s4749_s5 = sld [smem:[#allocation25_spill]] }
  0x27   : > { %s477_s14 = scalar_lea.vmem [#allocation5], %s3181_s25  ;;  %s4110_s27 = scalar_lea.sflag [#allocation6], %s473_s24 }
  0x28   : > { %s484_s21 = sshll.u32 %s477_s14, 4  ;;  %p4116_p13 = pneg %p4096_p10  ;;  %s4107_s21 = int_to_ptr.vmem [resolvable:$true] %s484_s21 }
  0x2c   : > { %s4105_s16 = scalar_lea.hbm %s4749_s5, %s3315_s18  ;;  %s3750_s14 = scalar_lea.hbm %s4749_s5, 2048 }
  0x2d   : > { %s3745_s13 = scalar_lea.hbm %s4105_s16, 1024  ;;  %p3751_p2 = scmp.lt.u32.totalorder %s4105_s16, %s4749_s5 }
  0x2e   : > { %p3746_p12 = scmp.ne.s32.totalorder %s4105_s16, %s3745_s13  ;;  %p3752_p3 = scmp.lt.u32.totalorder %s3750_s14, %s3745_s13 }
  0x2f   : > { %p3754_p5 = scmp.lt.u32.totalorder %s3745_s13, %s4105_s16 }
  0x30   : > { %p3748_p0 = pnand %p4116_p13, %p3746_p12  ;;  %p3753_p4 = por %p3752_p3, %p3751_p2 }
  0x32   : > { %p3749_p1 = pneg %p3748_p0  ;;  %p3755_p6 = por %p3754_p5, %p3753_p4 }
  0x34   : > { %p3756_p7 = pnand %p3755_p6, %p3749_p1 }
  0x36   : > { %3759 = shalt.err (!%p3756_p7)
}
  0x37   : > { %s3760_s24 = scalar_lea.vmem %s4107_s21, 1024  ;;  %s3941_s17 = smov [#allocation5]  }
  0x38   : > { %p3761_p8 = scmp.ne.s32.totalorder %s4107_s21, %s3760_s24  ;;  %s3765_s18 = sshll.u32 %s3941_s17, 4  ;;  %s3766_s18 = int_to_ptr.vmem [resolvable:$false] %s3765_s18 }
  0x39   : > { %s3767_s25 = scalar_lea.vmem %s3766_s18, 2048  ;;  %p3768_p11 = scmp.lt.s32.totalorder %s4107_s21, %s3766_s18 }
  0x3a   : > { %p3763_p12 = pnand %p3761_p8, %p4116_p13  ;;  %p3769_p9 = scmp.lt.s32.totalorder %s3767_s25, %s3760_s24 }
  0x3c   : > { %p3764_p0 = pneg %p3763_p12  ;;  %p3770_p2 = por %p3769_p9, %p3768_p11 }
  0x3e   : > { %p3771_p3 = pnand %p3770_p2, %p3764_p0 }
  0x40   : > { %3774 = shalt.err (!%p3771_p3)
}
  0x41   : > { %s4722_s13 = smov 64   ;;  %s4723_s14 = smov 4  }
  0x42   : > { %3502 = dma.hbm_to_vmem [thread:$0]  (!%p4096_p10), %s4105_s16, 1024, %s4107_s21, %s4110_s27, %s4722_s13, %s4722_s13, %s4723_s14  }
  0x43   : > { %p565_p9 = scmp.lt.s32.totalorder %s3939_s15, 5  ;;  %p4751_p11 = scmp.ge.s32.totalorder %s3939_s15, 1 }
  0x44   : > { %s3484_s24 = smul.u32 192, %s4089_s22  ;;  %s4753_s3 = sld [smem:[#allocation23_spill]] }
  0x45   : > { %p4146_p1 = pnand %p4751_p11, %p565_p9  ;;  %s3485_s17 = smul.u32 3072, %s3931_s30 }
  0x46   : > { %s449_s12 = scalar_lea.vmem [#allocation3], %s3484_s24  ;;  %s3184_s16 = sshll.u32 %s4089_s22, 8 }
  0x47   : > { %s4752_s19 = scalar_select %p4146_p1, 1, 0 }
  0x48   : > { %s456_s8 = sshll.u32 %s449_s12, 4  ;;  %s446_s21 = scalar_lea.sflag [#allocation4], %s4089_s22  ;;  %s4157_s8 = int_to_ptr.vmem [resolvable:$true] %s456_s8 }
  0x4a   : > { %s4155_s5 = scalar_lea.hbm %s4753_s3, %s3485_s17  ;;  %s3780_s17 = scalar_lea.hbm %s4753_s3, 6144 }
  0x4b   : > { %s3775_s13 = scalar_lea.hbm %s4155_s5, 3072  ;;  %p3781_p7 = scmp.lt.u32.totalorder %s4155_s5, %s4753_s3 }
  0x4c   : > { %p3776_p4 = scmp.ne.s32.totalorder %s4155_s5, %s3775_s13  ;;  %p3782_p8 = scmp.lt.u32.totalorder %s3780_s17, %s3775_s13 }
  0x4d   : > { %p3784_p0 = scmp.lt.u32.totalorder %s3775_s13, %s4155_s5 }
  0x4e   : > { %p3778_p5 = pnand %p3776_p4, %p4116_p13  ;;  %p3783_p12 = por %p3782_p8, %p3781_p7 }
  0x50   : > { %p3779_p6 = pneg %p3778_p5  ;;  %p3785_p2 = por %p3784_p0, %p3783_p12 }
  0x52   : > { %p3786_p3 = pnand %p3785_p2, %p3779_p6 }
  0x54   : > { %3789 = shalt.err (!%p3786_p3)
}
  0x55   : > { %s3790_s12 = scalar_lea.vmem %s4157_s8, 3072  ;;  %s3944_s4 = smov [#allocation3]  }
  0x56   : > { %p3791_p9 = scmp.ne.s32.totalorder %s4157_s8, %s3790_s12  ;;  %s3795_s14 = sshll.u32 %s3944_s4, 4  ;;  %s3796_s14 = int_to_ptr.vmem [resolvable:$false] %s3795_s14 }
  0x57   : > { %s3797_s24 = scalar_lea.vmem %s3796_s14, 6144  ;;  %p3798_p5 = scmp.lt.s32.totalorder %s4157_s8, %s3796_s14 }
  0x58   : > { %p3793_p11 = pnand %p3791_p9, %p4116_p13  ;;  %p3799_p1 = scmp.lt.s32.totalorder %s3797_s24, %s3790_s12 }
  0x5a   : > { %p3794_p4 = pneg %p3793_p11  ;;  %p3800_p7 = por %p3799_p1, %p3798_p5 }
  0x5c   : > { %p3801_p8 = pnand %p3800_p7, %p3794_p4 }
  0x5e   : > { %3804 = shalt.err (!%p3801_p8)
}
  0x5f   : > { %s3945_s13 = smov 192   ;;  %s3946_s17 = smov 12  }
  0x60   : > { %3499 = dma.hbm_to_vmem [thread:$0]  (!%p4096_p10), %s4155_s5, 3072, %s4157_s8, %s446_s21, %s3945_s13, %s3945_s13, %s3946_s17  }
  0x61   : > { %s3316_s18 = sshll.u32 %s3931_s30, 12  ;;  %s4754_s9 = sld [smem:[#allocation28_spill]] }
  0x62   : > { %s516_s14 = scalar_lea.vmem [#allocation7], %s3184_s16 }
  0x63   : > { %s523_s24 = sshll.u32 %s516_s14, 4  ;;  %s4194_s24 = int_to_ptr.vmem [resolvable:$true] %s523_s24 }
  0x67   : > { %s4190_s4 = scalar_lea.hbm %s4754_s9, %s3316_s18  ;;  %s3810_s21 = scalar_lea.hbm %s4754_s9, 8192 }
  0x68   : > { %s3805_s3 = scalar_lea.hbm %s4190_s4, 4096  ;;  %p3811_p0 = scmp.lt.u32.totalorder %s4190_s4, %s4754_s9 }
  0x69   : > { %p3806_p1 = scmp.ne.s32.totalorder %s4190_s4, %s3805_s3  ;;  %p3812_p2 = scmp.lt.u32.totalorder %s3810_s21, %s3805_s3 }
  0x6a   : > { %p3814_p9 = scmp.lt.u32.totalorder %s3805_s3, %s4190_s4 }
  0x6b   : > { %p3808_p6 = pnand %p3806_p1, %p4116_p13  ;;  %p3813_p3 = por %p3812_p2, %p3811_p0 }
  0x6d   : > { %p3809_p12 = pneg %p3808_p6  ;;  %p3815_p11 = por %p3814_p9, %p3813_p3 }
  0x6f   : > { %p3816_p4 = pnand %p3815_p11, %p3809_p12 }
  0x71   : > { %3819 = shalt.err (!%p3816_p4)
}
  0x72   : > { %s3820_s25 = scalar_lea.vmem %s4194_s24, 4096  ;;  %s3947_s12 = smov [#allocation7]  }
  0x73   : > { %p3821_p5 = scmp.ne.s32.totalorder %s4194_s24, %s3820_s25  ;;  %s3825_s14 = sshll.u32 %s3947_s12, 4  ;;  %s3826_s14 = int_to_ptr.vmem [resolvable:$false] %s3825_s14 }
  0x74   : > { %s3827_s5 = scalar_lea.vmem %s3826_s14, 8192  ;;  %p3828_p1 = scmp.lt.s32.totalorder %s4194_s24, %s3826_s14 }
  0x75   : > { %p3823_p7 = pnand %p3821_p5, %p4116_p13  ;;  %p3829_p6 = scmp.lt.s32.totalorder %s3827_s5, %s3820_s25 }
  0x77   : > { %p3824_p8 = pneg %p3823_p7  ;;  %p3830_p0 = por %p3829_p6, %p3828_p1 }
  0x79   : > { %p3831_p2 = pnand %p3830_p0, %p3824_p8 }
  0x7b   : > { %3834 = shalt.err (!%p3831_p2)
}
  0x7c   : > { %s3948_s3 = smov 256   ;;  %s3949_s8 = smov 16  }
  0x7d   : > { %3505 = dma.hbm_to_vmem [thread:$0]  (!%p4096_p10), %s4190_s4, 4096, %s4194_s24, %s4110_s27, %s3948_s3, %s3948_s3, %s3949_s8  }
  0x7e   : > { %s4755_s11 = sld [smem:[#allocation30_spill]]  ;;  %s544_s25 = scalar_lea.vmem [#allocation8], %s3184_s16 }
  0x7f   : > { %s551_s12 = sshll.u32 %s544_s25, 4  ;;  %s541_s14 = scalar_lea.sflag [#allocation9], %s4089_s22  ;;  %s4227_s12 = int_to_ptr.vmem [resolvable:$true] %s551_s12 }
  0x84   : > { %s4223_s17 = scalar_lea.hbm %s4755_s11, %s3316_s18  ;;  %s3840_s18 = scalar_lea.hbm %s4755_s11, 8192 }
  0x85   : > { %s3835_s5 = scalar_lea.hbm %s4223_s17, 4096  ;;  %p3841_p11 = scmp.lt.u32.totalorder %s4223_s17, %s4755_s11 }
  0x86   : > { %p3836_p12 = scmp.ne.s32.totalorder %s4223_s17, %s3835_s5  ;;  %p3842_p4 = scmp.lt.u32.totalorder %s3840_s18, %s3835_s5 }
  0x87   : > { %p3844_p7 = scmp.lt.u32.totalorder %s3835_s5, %s4223_s17 }
  0x88   : > { %p3838_p3 = pnand %p3836_p12, %p4116_p13  ;;  %p3843_p5 = por %p3842_p4, %p3841_p11 }
  0x8a   : > { %p3839_p9 = pneg %p3838_p3  ;;  %p3845_p8 = por %p3844_p7, %p3843_p5 }
  0x8c   : > { %p3846_p1 = pnand %p3845_p8, %p3839_p9 }
  0x8e   : > { %3849 = shalt.err (!%p3846_p1)
}
  0x8f   : > { %s3850_s16 = scalar_lea.vmem %s4227_s12, 4096  ;;  %s3950_s8 = smov [#allocation8]  }
  0x90   : > { %p3851_p6 = scmp.ne.s32.totalorder %s4227_s12, %s3850_s16  ;;  %s3855_s21 = sshll.u32 %s3950_s8, 4  ;;  %s3856_s21 = int_to_ptr.vmem [resolvable:$false] %s3855_s21 }
  0x91   : > { %s3857_s13 = scalar_lea.vmem %s3856_s21, 8192  ;;  %p3858_p12 = scmp.lt.s32.totalorder %s4227_s12, %s3856_s21 }
  0x92   : > { %p3853_p0 = pnand %p3851_p6, %p4116_p13  ;;  %p3859_p3 = scmp.lt.s32.totalorder %s3857_s13, %s3850_s16 }
  0x94   : > { %p3854_p2 = pneg %p3853_p0  ;;  %p3860_p11 = por %p3859_p3, %p3858_p12 }
  0x96   : > { %p3861_p4 = pnand %p3860_p11, %p3854_p2 }
  0x98   : > { %3864 = shalt.err (!%p3861_p4)
}
  0x99   : > { %s4756_s25 = smov 4   ;;  %s4757_s5 = smov 64  }
  0x9a   : > { %3508 = dma.hbm_to_vmem [thread:$0]  (!%p4096_p10), %s4223_s17, 4096, %s4227_s12, %s541_s14, %s4757_s5, %s4757_s5, %s4756_s25  }
  0x9b   : > { %p4758_p13 = scmp.ne.s32.totalorder %s4752_s19, 0 }
  0x9d   : > { %569 = sbr.rel (%p4758_p13) target bundleno = 2827 (0xb0b), region = 72 }
  0xa4   : > { %s571_s10 = sand.u32 1, %s3915_s26   ;;  %p4759_p9 = scmp.ne.s32.totalorder %s4747_s23, 0 }
  0xa5   : > { %s3486_s27 = smul.u32 192, %s571_s10  ;;  %s572_s4 = scalar_lea.sflag [#allocation4], %s571_s10 }
  0xa7   : > { %s4259_s18 = scalar_lea.vmem [#allocation3], %s3486_s27 }
  0xa8   : > { %3898 = dma.done.wait (%p4759_p9), %s572_s4, 3072  }
  0xa9   : > { %3900 = vsyncadd (%p4759_p9), %s572_s4, 4294964224  ;;  %s4760_s22 = sadd.s32 4294967295, %s3939_s15   ;;  %s3191_s17 = sshll.u32 %s571_s10, 6 }
  0xaa   : > { %s580_s20 = sand.u32 1, %s4760_s22   ;;  %s4267_s19 = scalar_lea.vmem [#allocation5], %s3191_s17 }
  0xab   : > { %s581_s12 = scalar_lea.sflag [#allocation6], %s580_s20 }
  0xac   : > { %3902 = dma.done.wait (%p4759_p9), %s581_s12, 5120  }
  0xad   : > { %3904 = vsyncadd (%p4759_p9), %s581_s12, 4294962176  ;;  %s3192_s14 = sshll.u32 %s571_s10, 8  ;;  %s599_s3 = scalar_lea.sflag [#allocation9], %s571_s10 }
  0xae   : > { %s4273_s24 = scalar_lea.vmem [#allocation7], %s3192_s14  ;;  %s4275_s16 = scalar_lea.vmem [#allocation8], %s3192_s14 }
  0xaf   : > { %4761 = sst [smem:[#allocation21_spill]] %s4275_s16 }
  0xb0   : > { %3906 = dma.done.wait (%p4759_p9), %s599_s3, 4096  }
  0xb1   : > { %3908 = vsyncadd (%p4759_p9), %s599_s3, 4294963200  ;;  %p689_p10 = scmp.lt.s32.totalorder %s3927_s29, 1  ;;  %p693_p5 = scmp.lt.s32.totalorder %s3923_s28, 1 }
  0xb2   : > { %s4762_s0 = sld [smem:[#allocation22_spill]]  ;;  %s4764_s13 = sld [smem:[#allocation24_spill]] }
  0xb3   : > { %s4792_s29 = smov (!%p689_p10, %s3927_s29), 1  ;;  %s4765_s27 = sld [smem:[#allocation27_spill]] }
  0xb4   : > { %s4285_s8 = scalar_select %p693_p5, %s3923_s28, 1 }
  0xb5   : > { %s3194_s21 = sshll.u32 %s4792_s29, 3  ;;  %s4766_s15 = sld [smem:[#allocation31_spill]] }
  0xb6   : > { %s3487_s17 = smul.u32 3, %s4285_s8  ;;  %s3195_s4 = sshll.u32 %s4285_s8, 2 }
  0xb7   : > { %s4767_s3 = sld [smem:[#allocation29_spill]]  ;;  %s4768_s29 = sld [smem:[#allocation32_spill]] }
  0xb8   : > { %s692_s25 = scalar_lea.vmem %s4762_s0, %s3194_s21  ;;  %s4310_s0 = scalar_lea.vmem %s4764_s13, %s3487_s17 }
  0xb9   : > { %s711_s26 = scalar_lea.vmem %s4765_s27, %s4285_s8  ;;  %p3197_p7 = scmp.ne.s32.totalorder %s3923_s28, 0 }
  0xba   : > { %v728_v0 = vld [vmem:[%s692_s25] sm:$0xff] (!%p3197_p7) }
  0xbb   : > { %s718_s16 = scalar_lea.vmem %s4766_s15, %s4285_s8  ;;  %727 = sbr.rel (%p3197_p7) target bundleno = 194 (0xc2), region = 92  ;;  %729 = vst [vmem:[#allocation2] sm:$0xff] (!%p3197_p7), %v728_v0 }
  0xbd   : > { %s4324_s6 = scalar_lea.vmem %s4767_s3, %s3195_s4  ;;  %s4329_s30 = scalar_lea.vmem %s4768_s29, %s3194_s21 }
  0xc2 PF: > { %v730_v1 = vld [vmem:[#allocation2] sm:$0xff]  ;;  %v3588_v2 = vld [vmem:[%s4259_s18 + $0x4] ss:$12 sps:$4 sm:$0xff]   ;;  %v3590_v3 = vld [vmem:[%s4259_s18] ss:$12 sps:$4 sm:$0xff]   ;;  %v3951_v4 = vmov 0.0   ;;  %s4769_s25 = scalar_lea.vmem %s4704_s1, %s4285_s8  ;;  %s4770_s20 = scalar_lea.vmem %s4705_s2, %s4285_s8  ;;  %v794_v42 = vlaneseq }
  0xc3   : > { %733 = vadd.xlane.f32.xlu0 %v730_v1  ;;  %3396 = vmatprep.subr.bf16.mxu1 %v3951_v4  ;;  %v3591_v5 = vld [vmem:[%s4259_s18 + $0x8] ss:$12 sps:$4 sm:$0xff]   ;;  %v3594_v7 = vld [vmem:[%s4259_s18 + $0x18] ss:$12 sps:$4 sm:$0xff]   ;;  %v3595_v8 = vld [vmem:[%s4259_s18 + $0x20] ss:$12 sps:$4 sm:$0xff]   ;;  %s4774_s22 = scalar_lea.vmem %s4710_s7, %s4285_s8 }
  0xc4   : > { %v3592_v6 = vld [vmem:[%s4259_s18 + $0x1c] ss:$12 sps:$4 sm:$0xff]   ;;  %937 = vmatprep.subr.bf16.mxu0 %v3588_v2  ;;  %v3596_v9 = vld [vmem:[%s4259_s18 + $0x34] ss:$12 sps:$4 sm:$0xff]   ;;  %3397 = vmatpush3.bf16.msra.mxu1 %v3591_v5  ;;  %v3599_v15 = vld [vmem:[%s4259_s18 + $0x38] ss:$12 sps:$4 sm:$0xff]  }
  0xc5   : > { %938 = vmatpush1.bf16.msra.mxu0 %v3590_v3  ;;  %3398 = vmatprep.subr.bf16.mxu1 %v3951_v4  ;;  %v3598_v14 = vld [vmem:[%s4259_s18 + $0x30] ss:$12 sps:$4 sm:$0xff]   ;;  %v3600_v16 = vld [vmem:[%s4259_s18 + $0x4c] ss:$12 sps:$4 sm:$0xff]   ;;  %v3602_v17 = vld [vmem:[%s4259_s18 + $0x48] ss:$12 sps:$4 sm:$0xff]  }
  0xc6   : > { %939 = vmatprep.subr.bf16.mxu0 %v3592_v6  ;;  %v3603_v18 = vld [vmem:[%s4259_s18 + $0x50] ss:$12 sps:$4 sm:$0xff]   ;;  %v3606_v20 = vld [vmem:[%s4259_s18 + $0x60] ss:$12 sps:$4 sm:$0xff]   ;;  %v3607_v21 = vld [vmem:[%s4259_s18 + $0x68] ss:$12 sps:$4 sm:$0xff]  }
  0xc7   : > { %v3604_v19 = vld [vmem:[%s4259_s18 + $0x64] ss:$12 sps:$4 sm:$0xff]   ;;  %v3608_v22 = vld [vmem:[%s4259_s18 + $0x7c] ss:$12 sps:$4 sm:$0xff]   ;;  %v3611_v24 = vld [vmem:[%s4259_s18 + $0x80] ss:$12 sps:$4 sm:$0xff]  }
  0xc8   : > { %3399 = vmatpush3.bf16.msra.mxu1 %v3595_v8  ;;  %v3610_v23 = vld [vmem:[%s4259_s18 + $0x78] ss:$12 sps:$4 sm:$0xff]   ;;  %v3612_v25 = vld [vmem:[%s4259_s18 + $0x94] ss:$12 sps:$4 sm:$0xff]   ;;  %v3952_v26 = vmov 0   ;;  %vm3953_vm0 = vmmov 0  }
  0xc9   : > { %940 = vmatpush1.bf16.msra.mxu0 %v3594_v7  ;;  %3400 = vmatprep.subr.bf16.mxu1 %v3951_v4  ;;  %v3614_v27 = vld [vmem:[%s4259_s18 + $0x90] ss:$12 sps:$4 sm:$0xff]   ;;  %v3615_v28 = vld [vmem:[%s4259_s18 + $0x98] ss:$12 sps:$4 sm:$0xff]   ;;  %v3618_v30 = vld [vmem:[%s4259_s18 + $0xa8] ss:$12 sps:$4 sm:$0xff]  }
  0xca   : > { %941 = vmatprep.subr.bf16.mxu0 %v3596_v9  ;;  %969 = vmatprep.mubr.bf16.mxu0 %v3952_v26  ;;  %v3616_v29 = vld [vmem:[%s4259_s18 + $0xac] ss:$12 sps:$4 sm:$0xff]   ;;  %v3619_v31 = vld [vmem:[%s4259_s18 + $0xb0] ss:$12 sps:$4 sm:$0xff]   ;;  %v4383_v43 = vshrl.u32 %v794_v42, 7  ;;  %s3955_s17 = smov 96  }
  0xcb   : > { %3412 = vmatprep.mubr.msk.bf16.mxu1 %vm3953_vm0, %v3951_v4  ;;  %v3198_v36 = vld [vmem:[%s4769_s25] ss:$0 sm:$0xff]  ;;  %s3956_s3 = smov 64   ;;  %v3957_v61 = vmov 1983009808   ;;  %vm1525_vm1 = vcmask 261120  }
  0xcc   : > { %3401 = vmatpush3.bf16.msra.mxu1 %v3599_v15  ;;  %v3199_v38 = vld [vmem:[%s4770_s20] ss:$0 sm:$0xff]  ;;  %v800_v44 = vsub.s32 1, %v4383_v43  ;;  %v796_v47 = vsub.s32 0, %v4383_v43  ;;  %v1029_v62 = vunpack.c.l.s4 %v3957_v61  ;;  %v3958_v63 = vmov 1934713408  }
  0xcd   : > { %942 = vmatpush1.bf16.msra.mxu0 %v3598_v14  ;;  %3402 = vmatprep.subr.bf16.mxu1 %v3951_v4  ;;  %v4387_v45 = vld [vmem:[%s4310_s0] sm:$0x7]  ;;  %s3954_s0 = smov 32   ;;  %v1046_v0 = vunpack.c.l.s4 %v3958_v63  ;;  %vm1710_vm2 = vcmask 64512   ;;  %vm1762_vm3 = vcmask 1043456   ;;  %vm2115_vm4 = vcmask 523264  }
  0xce   : > { %943 = vmatprep.subr.bf16.mxu0 %v3600_v16  ;;  %v801_v46 = vrot.slane %v4387_v45, %v800_v44  ;;  %v797_v57 = vrot.slane %v4387_v45, %v796_v47  ;;  %vm2118_vm5 = vcmask 785408   ;;  %s4771_s23 = sld [smem:[#allocation26_spill]]  ;;  %s4773_s5 = sld [smem:[#allocation21_spill]] }
  0xcf   : > { %v1047_v2 = vunpack.c.0.s8 %v1046_v0  ;;  %p3312_p8 = scmp.ne.s32.totalorder %s3923_s28, 1 }
  0xd0   : > { %3403 = vmatpush3.bf16.msra.mxu1 %v3603_v18 }
  0xd1   : > { %944 = vmatpush1.bf16.msra.mxu0 %v3602_v17  ;;  %3404 = vmatprep.subr.bf16.mxu1 %v3951_v4  ;;  %v4408_v7 = vsub.s32 %v1047_v2, %v4383_v43 }
  0xd2   : > { %945 = vmatprep.subr.bf16.mxu0 %v3604_v19 }
  0xd4   : > { %3405 = vmatpush3.bf16.msra.mxu1 %v3607_v21  ;;  %s4772_s13 = scalar_lea.vmem %s4771_s23, %s4285_s8 }
  0xd5   : > { %946 = vmatpush1.bf16.msra.mxu0 %v3606_v20  ;;  %3406 = vmatprep.subr.bf16.mxu1 %v3951_v4 }
  0xd6   : > { %947 = vmatprep.subr.bf16.mxu0 %v3608_v22 }
  0xd8   : > { %3407 = vmatpush3.bf16.msra.mxu1 %v3611_v24 }
  0xd9   : > { %948 = vmatpush1.bf16.msra.mxu0 %v3610_v23  ;;  %3408 = vmatprep.subr.bf16.mxu1 %v3951_v4 }
  0xda   : > { %949 = vmatprep.subr.bf16.mxu0 %v3612_v25 }
  0xdc   : > { %3409 = vmatpush3.bf16.msra.mxu1 %v3615_v28 }
  0xdd   : > { %950 = vmatpush1.bf16.msra.mxu0 %v3614_v27  ;;  %3410 = vmatprep.subr.bf16.mxu1 %v3951_v4 }
  0xde   : > { %951 = vmatprep.subr.bf16.mxu0 %v3616_v29 }
  0xe0   : > { %3411 = vmatpush3.bf16.msra.mxu1 %v3619_v31 }
  0xe1   : > { %952 = vmatpush1.bf16.msra.mxu0 %v3618_v30  ;;  %3416 = vmatprep.subr.bf16.mxu1 %v3951_v4 }
  0xe2   : > { %3440 = vmatprep.subr.bf16.mxu0 %v3951_v4 }
 0x150   : > { %v734_v10 = vpop.xlane.xlu0 %733 }
 0x151   : > { %v736_v11 = vmul.f32 0.0078125, %v734_v10 }
 0x153   : > { %v737_v12 = vsub.f32 %v730_v1, %v736_v11  ;;  %v1030_v1 = vunpack.c.0.s8 %v1029_v62 }
 0x155   : > { %v738_v13 = vmul.f32 %v737_v12, %v737_v12  ;;  %v4405_v3 = vsub.s32 %v1030_v1, %v4383_v43 }
 0x157   : > { %739 = vadd.xlane.f32.xlu0 %v738_v13 }
 0x1e4   : > { %v740_v32 = vpop.xlane.xlu0 %739 }
 0x1e5   : > { %v741_v33 = vmul.f32 0.0078125, %v740_v32 }
 0x1e7   : > { %v742_v34 = vadd.f32 1e-05, %v741_v33 }
 0x1e9   : > { %3708 = vrsqrt.f32 %v742_v34 }
 0x1f3   : > { %v3709_v35 = vpop.eup %3708 }
 0x1f4   : > { %v744_v37 = vmul.f32 %v3709_v35, %v737_v12 }
 0x1f6   : > { %v751_v39 = vmul.f32 %v3198_v36, %v744_v37 }
 0x1f8   : > { %v758_v40 = vadd.f32 %v3199_v38, %v751_v39 }
 0x1fa   : > { %v759_v41 = vpack.c.bf16 %v758_v40, %v758_v40 }
 0x1fc   : > { %970 = vmatmul.mubr.bf16.vlgmr.msra.gmra.mrb[0].mxu0 %v759_v41  ;;  %3413 = vmatmul.mubr.bf16.vlgmr.msra.gmra.mrb[0].mxu1 %v759_v41 }
 0x1fd   : > { %3418 = vmatprep.mubr.msk.bf16.mxu1 %vm3953_vm0, %v3951_v4  ;;  %3442 = vmatprep.mubr.msk.bf16.mxu0 %vm3953_vm0, %v3951_v4 }
 0x2cf   : > { %v971_v48 = vpop.f32.mrb[0].mxu0  ;;  %v4393_v49 = vpop.f32.mrb[0].mxu1 }
 0x2d0   : > { %v973_v50 = vpop.f32.mrb[1].mxu0  ;;  %v3414_v51 = vpop.f32.mrb[1].mxu1  ;;  %v972_v59 = vadd.f32 %v971_v48, %v797_v57 }
 0x2d1   : > { %v974_v52 = vadd.f32 %v973_v50, %v801_v46  ;;  %v975_v53 = vpop.f32.mrb[2].mxu0  ;;  %v1015_v54 = vpop.f32.mrb[2].mxu1 }
 0x2d2   : > { %v976_v55 = vpop.f32.mrb[3].mxu0  ;;  %v3415_v56 = vpop.f32.mrb[3].mxu1  ;;  %v1018_v60 = vpack.c.bf16 %v972_v59, %v972_v59 }
 0x2d3   : > { %v1019_v58 = vpack.c.bf16 %v974_v52, %v974_v52 }
 0x2d4   : > { %v1034_v28 = vrot.slane %v1018_v60, %v4405_v3 }
 0x2d5   : > { %1194 = vrot.lane.b32.xlu0 %v1019_v58, %s3954_s0  ;;  %1190 = vrot.lane.b32.xlu1 %v1019_v58, %s3955_s17  ;;  %v1202_v16 = vrot.slane %v1019_v58, %v4405_v3 }
 0x2d9   : > { %1192 = vrot.lane.b32.xlu1 %v1019_v58, %s3956_s3 }
 0x2dd   : > { %1022 = vrot.lane.b32.xlu1 %v1018_v60, %s3955_s17 }
 0x2e1   : > { %1024 = vrot.lane.b32.xlu1 %v1018_v60, %s3956_s3 }
 0x2e5   : > { %1026 = vrot.lane.b32.xlu1 %v1018_v60, %s3954_s0 }
 0x347   : > { %v1195_v5 = vpop.permute.xlu0 %1194  ;;  %v1191_v6 = vpop.permute.xlu1 %1190 }
 0x348   : > { %v1244_v8 = vrot.slane %v1195_v5, %v4405_v3  ;;  %v1236_v9 = vrot.slane %v1191_v6, %v4405_v3 }
 0x34a   : > { %v1245_v10 = vcombine.low %v1236_v9, %v1244_v8  ;;  %v1246_v11 = vcombine.high %v1236_v9, %v1244_v8 }
 0x34b   : > { %v1193_v12 = vpop.permute.xlu1 %1192 }
 0x34c   : > { %v1253_v13 = vrot.slane %v1245_v10, %v4408_v7  ;;  %v1260_v14 = vrot.slane %v1246_v11, %v4408_v7  ;;  %v1210_v15 = vrot.slane %v1193_v12, %v4405_v3 }
 0x34e   : > { %v1261_v17 = vcombine.high %v1253_v13, %v3952_v26  ;;  %v1211_v18 = vcombine.low %v1202_v16, %v1210_v15  ;;  %v1212_v19 = vcombine.high %v1202_v16, %v1210_v15  ;;  %v1262_v21 = vcombine.high %v1260_v14, %v3952_v26 }
 0x34f   : > { %v1023_v20 = vpop.permute.xlu1 %1022  ;;  %v1268_v24 = vshrl.u32 %v1253_v13, 16  ;;  %v1284_v27 = vshrl.u32 %v1260_v14, 16 }
 0x350   : > { %v1219_v22 = vrot.slane %v1211_v18, %v4408_v7  ;;  %v1226_v23 = vrot.slane %v1212_v19, %v4408_v7  ;;  %v1276_v25 = vshrl.u32 %v1261_v17, 16  ;;  %v1292_v34 = vshrl.u32 %v1262_v21, 16 }
 0x351   : > { %v1068_v58 = vrot.slane %v1023_v20, %v4405_v3 }
 0x352   : > { %v1227_v29 = vcombine.high %v1219_v22, %v3952_v26  ;;  %v1228_v30 = vcombine.high %v1226_v23, %v3952_v26  ;;  %v1265_v31 = vpack.i.b16 %v1253_v13, %v1219_v22  ;;  %v1267_v32 = vshrl.u32 %v1219_v22, 16 }
 0x353   : > { %v1025_v33 = vpop.permute.xlu1 %1024  ;;  %v1281_v35 = vpack.i.b16 %v1260_v14, %v1226_v23  ;;  %v1283_v36 = vshrl.u32 %v1226_v23, 16 }
 0x354   : > { %v1042_v37 = vrot.slane %v1025_v33, %v4405_v3  ;;  %v1269_v38 = vpack.i.b16 %v1268_v24, %v1267_v32  ;;  %v1273_v39 = vpack.i.b16 %v1261_v17, %v1227_v29  ;;  %v1275_v40 = vshrl.u32 %v1227_v29, 16 }
 0x355   : > { %v1289_v41 = vpack.i.b16 %v1262_v21, %v1228_v30  ;;  %v1285_v42 = vpack.i.b16 %v1284_v27, %v1283_v36  ;;  %v1291_v46 = vshrl.u32 %v1228_v30, 16  ;;  %v1295_v48 = vcombine.low %v1265_v31, %v1281_v35 }
 0x356   : > { %v1043_v50 = vcombine.low %v1034_v28, %v1042_v37  ;;  %v1277_v51 = vpack.i.b16 %v1276_v25, %v1275_v40  ;;  %v1044_v53 = vcombine.high %v1034_v28, %v1042_v37 }
 0x357   : > { %v1303_v52 = vcombine.low %v1273_v39, %v1289_v41  ;;  %v1027_v54 = vpop.permute.xlu1 %1026  ;;  %v1293_v55 = vpack.i.b16 %v1292_v34, %v1291_v46  ;;  %v1320_v56 = vcombine.low %v1269_v38, %v1285_v42  ;;  %v1302_v62 = vrot.slane %v1295_v48, %v4405_v3 }
 0x358   : > { %v1051_v57 = vrot.slane %v1043_v50, %v4408_v7  ;;  %v1058_v59 = vrot.slane %v1044_v53, %v4408_v7  ;;  %v1076_v60 = vrot.slane %v1027_v54, %v4405_v3 }
 0x359   : > { %v1310_v61 = vrot.slane %v1303_v52, %v4405_v3  ;;  %v1328_v63 = vcombine.low %v1277_v51, %v1293_v55  ;;  %v1327_v8 = vrot.slane %v1320_v56, %v4405_v3 }
 0x35a   : > { %v1059_v0 = vcombine.high %v1051_v57, %v3952_v26  ;;  %v1060_v1 = vcombine.high %v1058_v59, %v3952_v26  ;;  %v1077_v2 = vcombine.low %v1068_v58, %v1076_v60  ;;  %v1078_v5 = vcombine.high %v1068_v58, %v1076_v60 }
 0x35b   : > { %v1311_v6 = vcombine.low %v1302_v62, %v1310_v61  ;;  %v1335_v9 = vrot.slane %v1328_v63, %v4405_v3  ;;  %v1099_v10 = vshrl.u32 %v1051_v57, 16  ;;  %v1115_v14 = vshrl.u32 %v1058_v59, 16 }
 0x35c   : > { %v1085_v11 = vrot.slane %v1077_v2, %v4408_v7  ;;  %v1092_v12 = vrot.slane %v1078_v5, %v4408_v7  ;;  %v1107_v13 = vshrl.u32 %v1059_v0, 16  ;;  %v1123_v15 = vshrl.u32 %v1060_v1, 16 }
 0x35d   : > { %v1336_v16 = vcombine.low %v1327_v8, %v1335_v9  ;;  %v1318_v23 = vrot.slane %v1311_v6, %v4408_v7 }
 0x35e   : > { %v1093_v17 = vcombine.high %v1085_v11, %v3952_v26  ;;  %v1094_v18 = vcombine.high %v1092_v12, %v3952_v26  ;;  %v1097_v19 = vpack.i.b16 %v1085_v11, %v1051_v57  ;;  %v1100_v20 = vshrl.u32 %v1085_v11, 16 }
 0x35f   : > { %v1113_v21 = vpack.i.b16 %v1092_v12, %v1058_v59  ;;  %v1116_v22 = vshrl.u32 %v1092_v12, 16  ;;  %v1343_v24 = vrot.slane %v1336_v16, %v4408_v7  ;;  %v1348_v52 = vshrl.u32 %v1318_v23, 16 }
 0x360   : > { %v1101_v25 = vpack.i.b16 %v1100_v20, %v1099_v10  ;;  %v1105_v27 = vpack.i.b16 %v1093_v17, %v1059_v0  ;;  %v1108_v28 = vshrl.u32 %v1093_v17, 16  ;;  %v1121_v29 = vpack.i.b16 %v1094_v18, %v1060_v1 }
 0x361   : > { %v1117_v30 = vpack.i.b16 %v1116_v22, %v1115_v14  ;;  %v1124_v31 = vshrl.u32 %v1094_v18, 16  ;;  %v1127_v32 = vcombine.low %v1097_v19, %v1113_v21  ;;  %v1347_v33 = vpack.i.b16 %v1343_v24, %v1318_v23 }
 0x362   : > { %v1109_v34 = vpack.i.b16 %v1108_v28, %v1107_v13  ;;  %v1135_v35 = vcombine.low %v1105_v27, %v1121_v29  ;;  %v1349_v50 = vshrl.u32 %v1343_v24, 16  ;;  %v1344_v58 = vcombine.high %v1343_v24, %v3952_v26 }
 0x363   : > { %v1125_v36 = vpack.i.b16 %v1124_v31, %v1123_v15  ;;  %v1152_v37 = vcombine.low %v1101_v25, %v1117_v30  ;;  %v1530_v38 = vsel %vm1525_vm1, %v1347_v33, 0  ;;  %v1134_v40 = vrot.slane %v1127_v32, %v4405_v3 }
 0x364   : > { %v1142_v39 = vrot.slane %v1135_v35, %v4405_v3  ;;  %3417 = vmatpush3.bf16.xpose.msra.mxu1 %v1530_v38  ;;  %v1350_v55 = vpack.i.b16 %v1349_v50, %v1348_v52  ;;  %v1319_v60 = vcombine.high %v1318_v23, %v3952_v26  ;;  %v1355_v1 = vshrl.u32 %v1344_v58, 16 }
 0x365   : > { %v1160_v41 = vcombine.low %v1109_v34, %v1125_v36  ;;  %3422 = vmatprep.subr.bf16.mxu1 %v3951_v4  ;;  %v1159_v46 = vrot.slane %v1152_v37, %v4405_v3  ;;  %v804_v35 = vsub.s32 2, %v4383_v43 }
 0x366   : > { %v1143_v42 = vcombine.low %v1134_v40, %v1142_v39  ;;  %v1576_v57 = vsel %vm1525_vm1, %v1350_v55, 0  ;;  %v1353_v62 = vpack.i.b16 %v1344_v58, %v1319_v60  ;;  %v1354_v5 = vshrl.u32 %v1319_v60, 16 }
 0x367   : > { %v1167_v48 = vrot.slane %v1160_v41, %v4405_v3  ;;  %v805_v36 = vrot.slane %v4387_v45, %v804_v35 }
 0x368   : > { %v1150_v53 = vrot.slane %v1143_v42, %v4408_v7  ;;  %v1622_v0 = vsel %vm1525_vm1, %v1353_v62, 0  ;;  %v1356_v8 = vpack.i.b16 %v1355_v1, %v1354_v5 }
 0x369   : > { %v1168_v51 = vcombine.low %v1159_v46, %v1167_v48  ;;  %v1013_v37 = vadd.f32 %v4393_v49, %v805_v36 }
 0x36a   : > { %v1180_v61 = vshrl.u32 %v1150_v53, 16  ;;  %v1151_v6 = vcombine.high %v1150_v53, %v3952_v26  ;;  %v1668_v10 = vsel %vm1525_vm1, %v1356_v8, 0 }
 0x36b   : > { %v1175_v54 = vrot.slane %v1168_v51, %v4408_v7  ;;  %v1020_v38 = vpack.c.bf16 %v1013_v37, %v1013_v37 }
 0x36c   : > { %v1186_v12 = vshrl.u32 %v1151_v6, 16 }
 0x36d   : > { %v1179_v56 = vpack.i.b16 %v1175_v54, %v1150_v53  ;;  %v1181_v59 = vshrl.u32 %v1175_v54, 16  ;;  %v1176_v2 = vcombine.high %v1175_v54, %v3952_v26 }
 0x36f   : > { %3419 = vmatmul.mubr.msk.bf16.vlgmr.msra.gmra.mrb[4].mxu1 %vm1525_vm1, %v1179_v56  ;;  %v1182_v63 = vpack.i.b16 %v1181_v59, %v1180_v61  ;;  %v1185_v9 = vpack.i.b16 %v1176_v2, %v1151_v6  ;;  %v1187_v11 = vshrl.u32 %v1176_v2, 16 }
 0x370   : > { %3423 = vmatpush3.bf16.xpose.msra.mxu1 %v1576_v57  ;;  %3424 = vmatprep.mubr.msk.bf16.mxu1 %vm3953_vm0, %v3951_v4 }
 0x371   : > { %3428 = vmatprep.subr.bf16.mxu1 %v3951_v4  ;;  %v1188_v13 = vpack.i.b16 %v1187_v11, %v1186_v12 }
 0x377   : > { %3425 = vmatmul.mubr.msk.bf16.vlgmr.msra.gmra.mrb[8].mxu1 %vm1525_vm1, %v1182_v63 }
 0x378   : > { %3429 = vmatpush3.bf16.xpose.msra.mxu1 %v1622_v0  ;;  %3430 = vmatprep.mubr.msk.bf16.mxu1 %vm3953_vm0, %v3951_v4  ;;  %v1370_v0 = vrot.slane %v1020_v38, %v4405_v3 }
 0x379   : > { %3434 = vmatprep.subr.bf16.mxu1 %v3951_v4 }
 0x37f   : > { %3431 = vmatmul.mubr.msk.bf16.vlgmr.msra.gmra.mrb[12].mxu1 %vm1525_vm1, %v1185_v9 }
 0x380   : > { %3435 = vmatpush3.bf16.xpose.msra.mxu1 %v1668_v10  ;;  %3436 = vmatprep.mubr.msk.bf16.mxu1 %vm3953_vm0, %v3951_v4 }
 0x381   : > { %3446 = vmatprep.subr.bf16.mxu1 %v3951_v4 }
 0x387   : > { %3437 = vmatmul.mubr.msk.bf16.vlgmr.msra.gmra.mrb[16].mxu1 %vm1525_vm1, %v1188_v13 }
 0x388   : > { %3448 = vmatprep.mubr.msk.bf16.mxu1 %vm3953_vm0, %v3951_v4 }
 0x442   : > { %v1566_v14 = vpop.f32.mrb[4].mxu1 }
 0x443   : > { %v3420_v15 = vpop.f32.mrb[5].mxu1  ;;  %v1711_v16 = vsel %vm1710_vm2, %v1566_v14, -inf }
 0x444   : > { %1712 = vmax.xlane.f32.xlu1 %v1711_v16  ;;  %v1569_v17 = vpop.f32.mrb[6].mxu1 }
 0x445   : > { %v3421_v18 = vpop.f32.mrb[7].mxu1 }
 0x44a   : > { %v1612_v19 = vpop.f32.mrb[8].mxu1 }
 0x44b   : > { %v3426_v20 = vpop.f32.mrb[9].mxu1  ;;  %v1714_v21 = vsel %vm1710_vm2, %v1612_v19, -inf }
 0x44c   : > { %1715 = vmax.xlane.f32.xlu0 %v1714_v21  ;;  %v1615_v22 = vpop.f32.mrb[10].mxu1 }
 0x44d   : > { %v3427_v23 = vpop.f32.mrb[11].mxu1 }
 0x452   : > { %v1658_v24 = vpop.f32.mrb[12].mxu1 }
 0x453   : > { %v3432_v25 = vpop.f32.mrb[13].mxu1  ;;  %v1717_v27 = vsel %vm1710_vm2, %v1658_v24, -inf }
 0x454   : > { %1718 = vmax.xlane.f32.xlu1 %v1717_v27  ;;  %v1661_v28 = vpop.f32.mrb[14].mxu1 }
 0x455   : > { %v3433_v29 = vpop.f32.mrb[15].mxu1 }
 0x45a   : > { %v1704_v30 = vpop.f32.mrb[16].mxu1 }
 0x45b   : > { %v3438_v31 = vpop.f32.mrb[17].mxu1  ;;  %v1720_v32 = vsel %vm1710_vm2, %v1704_v30, -inf }
 0x45c   : > { %1721 = vmax.xlane.f32.xlu1 %v1720_v32  ;;  %v1707_v33 = vpop.f32.mrb[18].mxu1 }
 0x45d   : > { %v3439_v34 = vpop.f32.mrb[19].mxu1 }
 0x46d   : > { %1360 = vrot.lane.b32.xlu1 %v1020_v38, %s3956_s3 }
 0x4d1   : > { %v1713_v39 = vpop.xlane.xlu1 %1712 }
 0x4d2   : > { %v1723_v40 = vsub.f32 %v1566_v14, %v1713_v39 }
 0x4d4   : > { %v1727_v41 = vmul.f32 1.442695, %v1723_v40 }
 0x4d6   : > { %3710 = vpow2.f32 %v1727_v41 }
 0x4d9   : > { %v1716_v42 = vpop.xlane.xlu0 %1715 }
 0x4da   : > { %v1724_v46 = vsub.f32 %v1612_v19, %v1716_v42 }
 0x4dc   : > { %v1729_v48 = vmul.f32 1.442695, %v1724_v46 }
 0x4de   : > { %3712 = vpow2.f32 %v1729_v48 }
 0x4e0   : > { %v4480_v50 = vpop.eup %3710 }
 0x4e1   : > { %v1735_v51 = vsel %vm1710_vm2, %v4480_v50, 0.0  ;;  %v1719_v52 = vpop.xlane.xlu1 %1718 }
 0x4e2   : > { %1736 = vadd.xlane.f32.xlu0 %v1735_v51  ;;  %v1725_v53 = vsub.f32 %v1658_v24, %v1719_v52 }
 0x4e4   : > { %v1731_v54 = vmul.f32 1.442695, %v1725_v53 }
 0x4e6   : > { %3714 = vpow2.f32 %v1731_v54 }
 0x4e8   : > { %v4484_v45 = vpop.eup %3712 }
 0x4e9   : > { %v1738_v49 = vsel %vm1710_vm2, %v4484_v45, 0.0  ;;  %v1722_v55 = vpop.xlane.xlu1 %1721 }
 0x4ea   : > { %1739 = vadd.xlane.f32.xlu1 %v1738_v49  ;;  %v1726_v56 = vsub.f32 %v1704_v30, %v1722_v55 }
 0x4ec   : > { %v1733_v57 = vmul.f32 1.442695, %v1726_v56 }
 0x4ed   : > { %v1361_v62 = vpop.permute.xlu1 %1360 }
 0x4ee   : > { %3716 = vpow2.f32 %v1733_v57  ;;  %v1378_v63 = vrot.slane %v1361_v62, %v4405_v3 }
 0x4f0   : > { %v4490_v58 = vpop.eup %3714  ;;  %v1379_v2 = vcombine.low %v1370_v0, %v1378_v63  ;;  %v1380_v5 = vcombine.high %v1370_v0, %v1378_v63 }
 0x4f1   : > { %v1741_v59 = vsel %vm1710_vm2, %v4490_v58, 0.0 }
 0x4f2   : > { %v1387_v8 = vrot.slane %v1379_v2, %v4408_v7  ;;  %v1394_v10 = vrot.slane %v1380_v5, %v4408_v7 }
 0x4f4   : > { %v1395_v14 = vcombine.high %v1387_v8, %v3952_v26  ;;  %v1396_v17 = vcombine.high %v1394_v10, %v3952_v26  ;;  %v1435_v20 = vshrl.u32 %v1387_v8, 16  ;;  %v1451_v22 = vshrl.u32 %v1394_v10, 16 }
 0x4f6   : > { %v1443_v21 = vshrl.u32 %v1395_v14, 16  ;;  %v1459_v28 = vshrl.u32 %v1396_v17, 16 }
 0x4f8   : > { %1358 = vrot.lane.b32.xlu0 %v1020_v38, %s3955_s17  ;;  %v4494_v60 = vpop.eup %3716 }
 0x4f9   : > { %v1744_v61 = vsel %vm1710_vm2, %v4494_v60, 0.0 }
 0x4fb   : > { %1362 = vrot.lane.b32.xlu1 %v1020_v38, %s3954_s0 }
 0x517   : > { %1742 = vadd.xlane.f32.xlu0 %v1741_v59 }
 0x51f   : > { %1745 = vadd.xlane.f32.xlu1 %v1744_v61 }
 0x56f   : > { %v1737_v1 = vpop.xlane.xlu0 %1736 }
 0x570   : > { %3718 = vrcp.f32 %v1737_v1 }
 0x573   : > { %v1359_v9 = vpop.permute.xlu0 %1358 }
 0x574   : > { %v1404_v12 = vrot.slane %v1359_v9, %v4405_v3 }
 0x577   : > { %v1740_v6 = vpop.xlane.xlu1 %1739 }
 0x578   : > { %3720 = vrcp.f32 %v1740_v6 }
 0x57a   : > { %v3719_v55 = vpop.eup %3718 }
 0x57b   : > { %v1363_v11 = vpop.permute.xlu1 %1362  ;;  %v1751_v62 = vmul.f32 %v3719_v55, %v4480_v50 }
 0x57c   : > { %v1412_v13 = vrot.slane %v1363_v11, %v4405_v3 }
 0x57e   : > { %v1413_v15 = vcombine.low %v1404_v12, %v1412_v13  ;;  %v1414_v16 = vcombine.high %v1404_v12, %v1412_v13  ;;  %v1755_v13 = vpack.c.bf16 %v1751_v62, %v1751_v62 }
 0x580   : > { %v1421_v18 = vrot.slane %v1413_v15, %v4408_v7  ;;  %v1428_v19 = vrot.slane %v1414_v16, %v4408_v7 }
 0x582   : > { %v1429_v23 = vcombine.high %v1421_v18, %v3952_v26  ;;  %v1430_v24 = vcombine.high %v1428_v19, %v3952_v26  ;;  %v1433_v25 = vpack.i.b16 %v1421_v18, %v1387_v8  ;;  %v1436_v27 = vshrl.u32 %v1421_v18, 16  ;;  %v3721_v59 = vpop.eup %3720 }
 0x583   : > { %v1449_v29 = vpack.i.b16 %v1428_v19, %v1394_v10  ;;  %v1452_v30 = vshrl.u32 %v1428_v19, 16  ;;  %v1752_v5 = vmul.f32 %v3721_v59, %v4484_v45 }
 0x584   : > { %v1437_v31 = vpack.i.b16 %v1436_v27, %v1435_v20  ;;  %v1441_v32 = vpack.i.b16 %v1429_v23, %v1395_v14  ;;  %v1444_v33 = vshrl.u32 %v1429_v23, 16  ;;  %v1457_v34 = vpack.i.b16 %v1430_v24, %v1396_v17  ;;  %v3623_v27 = vld [vmem:[%s4267_s19 + $0x18] sm:$0xff]  }
 0x585   : > { %v1453_v36 = vpack.i.b16 %v1452_v30, %v1451_v22  ;;  %v1460_v37 = vshrl.u32 %v1430_v24, 16  ;;  %v1463_v38 = vcombine.low %v1433_v25, %v1449_v29  ;;  %v1756_v15 = vpack.c.bf16 %v1752_v5, %v1752_v5  ;;  %v3620_v24 = vld [vmem:[%s4267_s19] sm:$0xff]   ;;  %v3622_v25 = vld [vmem:[%s4267_s19 + $0x10] sm:$0xff]  }
 0x586   : > { %v1445_v39 = vpack.i.b16 %v1444_v33, %v1443_v21  ;;  %v1471_v40 = vcombine.low %v1441_v32, %v1457_v34  ;;  %v3626_v29 = vld [vmem:[%s4267_s19 + $0x30] sm:$0xff]  }
 0x587   : > { %v1461_v41 = vpack.i.b16 %v1460_v37, %v1459_v28  ;;  %v1488_v42 = vcombine.low %v1437_v31, %v1453_v36  ;;  %v1470_v46 = vrot.slane %v1463_v38, %v4405_v3  ;;  %v3625_v28 = vld [vmem:[%s4267_s19 + $0x28] sm:$0xff]  }
 0x588   : > { %v1478_v48 = vrot.slane %v1471_v40, %v4405_v3 }
 0x589   : > { %v1496_v51 = vcombine.low %v1445_v39, %v1461_v41  ;;  %v1495_v52 = vrot.slane %v1488_v42, %v4405_v3 }
 0x58a   : > { %v1479_v49 = vcombine.low %v1470_v46, %v1478_v48 }
 0x58b   : > { %v1503_v53 = vrot.slane %v1496_v51, %v4405_v3 }
 0x58c   : > { %v1486_v54 = vrot.slane %v1479_v49, %v4408_v7 }
 0x58d   : > { %v1504_v56 = vcombine.low %v1495_v52, %v1503_v53 }
 0x58e   : > { %v1487_v57 = vcombine.high %v1486_v54, %v3952_v26  ;;  %v1516_v0 = vshrl.u32 %v1486_v54, 16 }
 0x58f   : > { %v1511_v61 = vrot.slane %v1504_v56, %v4408_v7 }
 0x590   : > { %v1522_v6 = vshrl.u32 %v1487_v57, 16 }
 0x591   : > { %v1515_v63 = vpack.i.b16 %v1511_v61, %v1486_v54  ;;  %v1517_v1 = vshrl.u32 %v1511_v61, 16  ;;  %v1512_v2 = vcombine.high %v1511_v61, %v3952_v26 }
 0x593   : > { %v1764_v8 = vsel %vm1762_vm3, %v1515_v63, 0  ;;  %v1518_v9 = vpack.i.b16 %v1517_v1, %v1516_v0  ;;  %v1521_v10 = vpack.i.b16 %v1512_v2, %v1487_v57  ;;  %v1523_v11 = vshrl.u32 %v1512_v2, 16 }
 0x594   : > { %3441 = vmatpush3.bf16.msra.mxu0 %v1764_v8 }
 0x595   : > { %v1810_v12 = vsel %vm1762_vm3, %v1518_v9, 0  ;;  %3452 = vmatprep.subr.bf16.mxu0 %v3951_v4  ;;  %v1524_v50 = vpack.i.b16 %v1523_v11, %v1522_v6  ;;  %v1856_v14 = vsel %vm1762_vm3, %v1521_v10, 0 }
 0x596   : > { %3447 = vmatpush3.bf16.msra.mxu1 %v1810_v12 }
 0x597   : > { %3443 = vmatmul.mubr.msk.bf16.vlgmr.msra.gmra.mrb[4].mxu0 %vm1710_vm2, %v1755_v13  ;;  %3458 = vmatprep.subr.bf16.mxu1 %v3951_v4  ;;  %v1902_v45 = vsel %vm1762_vm3, %v1524_v50, 0 }
 0x598   : > { %3453 = vmatpush3.bf16.msra.mxu0 %v1856_v14  ;;  %3454 = vmatprep.mubr.msk.bf16.mxu0 %vm3953_vm0, %v3951_v4 }
 0x599   : > { %3449 = vmatmul.mubr.msk.bf16.vlgmr.msra.gmra.mrb[20].mxu1 %vm1710_vm2, %v1756_v15  ;;  %3464 = vmatprep.subr.bf16.mxu0 %v3951_v4 }
 0x59a   : > { %3459 = vmatpush3.bf16.msra.mxu1 %v1902_v45  ;;  %3460 = vmatprep.mubr.msk.bf16.mxu1 %vm3953_vm0, %v3951_v4 }
 0x5a4   : > { %v1743_v16 = vpop.xlane.xlu0 %1742 }
 0x5a5   : > { %3722 = vrcp.f32 %v1743_v16 }
 0x5ac   : > { %v1746_v17 = vpop.xlane.xlu1 %1745 }
 0x5ad   : > { %3724 = vrcp.f32 %v1746_v17 }
 0x5af   : > { %v3723_v18 = vpop.eup %3722 }
 0x5b0   : > { %v1753_v19 = vmul.f32 %v3723_v18, %v4490_v58  ;;  %v3621_v58 = vld [vmem:[%s4267_s19 + $0x8] sm:$0xff]  }
 0x5b2   : > { %v1757_v20 = vpack.c.bf16 %v1753_v19, %v1753_v19 }
 0x5b4   : > { %3455 = vmatmul.mubr.msk.bf16.vlgmr.msra.gmra.mrb[8].mxu0 %vm1710_vm2, %v1757_v20 }
 0x5b5   : > { %3480 = vmatprep.mubr.msk.bf16.mxu0 %vm3953_vm0, %v3951_v4  ;;  %3465 = vmatpush3.bf16.msra.mxu0 %v3620_v24 }
 0x5b6   : > { %3466 = vmatprep.subr.bf16.mxu0 %v3951_v4 }
 0x5b7   : > { %v3725_v21 = vpop.eup %3724 }
 0x5b8   : > { %v1754_v22 = vmul.f32 %v3725_v21, %v4494_v60  ;;  %v3624_v60 = vld [vmem:[%s4267_s19 + $0x20] sm:$0xff]  }
 0x5b9   : > { %3467 = vmatpush3.bf16.msra.mxu0 %v3621_v58 }
 0x5ba   : > { %v1758_v23 = vpack.c.bf16 %v1754_v22, %v1754_v22  ;;  %3468 = vmatprep.subr.bf16.mxu0 %v3951_v4 }
 0x5bc   : > { %3461 = vmatmul.mubr.msk.bf16.vlgmr.msra.gmra.mrb[24].mxu1 %vm1710_vm2, %v1758_v23 }
 0x5bd   : > { %2508 = vmatprep.mubr.bf16.mxu1 %v3952_v26  ;;  %3469 = vmatpush3.bf16.msra.mxu0 %v3622_v25 }
 0x5be   : > { %3470 = vmatprep.subr.bf16.mxu0 %v3951_v4 }
 0x5c1   : > { %3471 = vmatpush3.bf16.msra.mxu0 %v3623_v27 }
 0x5c2   : > { %3472 = vmatprep.subr.bf16.mxu0 %v3951_v4 }
 0x5c5   : > { %3473 = vmatpush3.bf16.msra.mxu0 %v3624_v60 }
 0x5c6   : > { %3474 = vmatprep.subr.bf16.mxu0 %v3951_v4 }
 0x5c9   : > { %3475 = vmatpush3.bf16.msra.mxu0 %v3625_v28 }
 0x5ca   : > { %3476 = vmatprep.subr.bf16.mxu0 %v3951_v4 }
 0x5cd   : > { %3477 = vmatpush3.bf16.msra.mxu0 %v3626_v29 }
 0x5ce   : > { %3478 = vmatprep.subr.bf16.mxu0 %v3951_v4 }
 0x66a   : > { %v1800_v30 = vpop.f32.mrb[4].mxu0 }
 0x66b   : > { %v3444_v31 = vpop.f32.mrb[5].mxu0  ;;  %v1944_v39 = vpack.c.bf16 %v1800_v30, %v1800_v30 }
 0x66c   : > { %v1803_v32 = vpop.f32.mrb[6].mxu0  ;;  %v1846_v33 = vpop.f32.mrb[20].mxu1  ;;  %v3627_v31 = vld [vmem:[%s4267_s19 + $0x38] sm:$0xff]  }
 0x66d   : > { %v3445_v34 = vpop.f32.mrb[7].mxu0  ;;  %v3450_v36 = vpop.f32.mrb[21].mxu1  ;;  %v1951_v48 = vrot.slane %v1944_v39, %v4405_v3  ;;  %v1978_v53 = vpack.c.bf16 %v1846_v33, %v1846_v33  ;;  %3479 = vmatpush3.bf16.msra.mxu0 %v3627_v31  ;;  %v3669_v31 = vld [vmem:[%s4273_s24 + $0xcc] ss:$16 sps:$4 sm:$0xff]  }
 0x66e   : > { %v1849_v37 = vpop.f32.mrb[22].mxu1 }
 0x66f   : > { %v3451_v38 = vpop.f32.mrb[23].mxu1  ;;  %v1985_v62 = vrot.slane %v1978_v53, %v4405_v3 }
 0x687   : > { %v1892_v40 = vpop.f32.mrb[8].mxu0 }
 0x688   : > { %v1952_v41 = vpack.c.bf16 %v1892_v40, %v1892_v40  ;;  %v3456_v42 = vpop.f32.mrb[9].mxu0 }
 0x689   : > { %v1895_v46 = vpop.f32.mrb[10].mxu0 }
 0x68a   : > { %v1959_v51 = vrot.slane %v1952_v41, %v4405_v3  ;;  %v3457_v49 = vpop.f32.mrb[11].mxu0 }
 0x68c   : > { %v1960_v52 = vcombine.low %v1951_v48, %v1959_v51  ;;  %v1961_v4 = vcombine.high %v1951_v48, %v1959_v51 }
 0x68e   : > { %v1968_v59 = vrot.slane %v1960_v52, %v4408_v7  ;;  %v1975_v0 = vrot.slane %v1961_v4, %v4408_v7 }
 0x68f   : > { %v1938_v54 = vpop.f32.mrb[24].mxu1 }
 0x690   : > { %v3462_v55 = vpop.f32.mrb[25].mxu1  ;;  %v1986_v56 = vpack.c.bf16 %v1938_v54, %v1938_v54  ;;  %v1976_v5 = vcombine.high %v1968_v59, %v3952_v26  ;;  %v1977_v9 = vcombine.high %v1975_v0, %v3952_v26  ;;  %v2016_v10 = vshrl.u32 %v1968_v59, 16 }
 0x691   : > { %v1941_v57 = vpop.f32.mrb[26].mxu1  ;;  %v2032_v15 = vshrl.u32 %v1975_v0, 16 }
 0x692   : > { %v3463_v61 = vpop.f32.mrb[27].mxu1  ;;  %v1993_v63 = vrot.slane %v1986_v56, %v4405_v3  ;;  %v2024_v14 = vshrl.u32 %v1976_v5, 16  ;;  %v2040_v21 = vshrl.u32 %v1977_v9, 16  ;;  %v3232_v57 = vld [vmem:[%s4772_s13] ss:$0 sm:$0xff] }
 0x694   : > { %v1994_v1 = vcombine.low %v1985_v62, %v1993_v63  ;;  %v1995_v2 = vcombine.high %v1985_v62, %v1993_v63 }
 0x696   : > { %v2002_v6 = vrot.slane %v1994_v1, %v4408_v7  ;;  %v2009_v8 = vrot.slane %v1995_v2, %v4408_v7 }
 0x698   : > { %v2010_v11 = vcombine.high %v2002_v6, %v3952_v26  ;;  %v2011_v12 = vcombine.high %v2009_v8, %v3952_v26  ;;  %v2014_v13 = vpack.i.b16 %v2002_v6, %v1968_v59  ;;  %v2017_v50 = vshrl.u32 %v2002_v6, 16  ;;  %v3631_v6 = vld [vmem:[%s4273_s24 + $0x8] ss:$16 sps:$4 sm:$0xff]  }
 0x699   : > { %v2030_v45 = vpack.i.b16 %v2009_v8, %v1975_v0  ;;  %v2033_v16 = vshrl.u32 %v2009_v8, 16  ;;  %v3744_v0 = vld [vmem:[#allocation2] sm:$0xff] }
 0x69a   : > { %v2018_v17 = vpack.i.b16 %v2017_v50, %v2016_v10  ;;  %v2022_v18 = vpack.i.b16 %v2010_v11, %v1976_v5  ;;  %v2025_v19 = vshrl.u32 %v2010_v11, 16  ;;  %v2038_v20 = vpack.i.b16 %v2011_v12, %v1977_v9  ;;  %v3630_v5 = vld [vmem:[%s4273_s24 + $0x4] ss:$16 sps:$4 sm:$0xff]   ;;  %v3633_v8 = vld [vmem:[%s4273_s24 + $0xc] ss:$16 sps:$4 sm:$0xff]  }
 0x69b   : > { %v2034_v22 = vpack.i.b16 %v2033_v16, %v2032_v15  ;;  %v2041_v23 = vshrl.u32 %v2011_v12, 16  ;;  %v2044_v24 = vcombine.low %v2014_v13, %v2030_v45  ;;  %v3636_v9 = vld [vmem:[%s4273_s24 + $0x24] ss:$16 sps:$4 sm:$0xff]   ;;  %2476 = vmatprep.subr.bf16.mxu1 %v3630_v5  ;;  %v3639_v10 = vld [vmem:[%s4273_s24 + $0x2c] ss:$16 sps:$4 sm:$0xff]   ;;  %2517 = vmatprep.subr.bf16.mxu0 %v3633_v8 }
 0x69c   : > { %v2026_v58 = vpack.i.b16 %v2025_v19, %v2024_v14  ;;  %v2052_v25 = vcombine.low %v2022_v18, %v2038_v20  ;;  %v3634_v11 = vld [vmem:[%s4273_s24 + $0x20] ss:$16 sps:$4 sm:$0xff]   ;;  %v3637_v12 = vld [vmem:[%s4273_s24 + $0x28] ss:$16 sps:$4 sm:$0xff]   ;;  %v3642_v13 = vld [vmem:[%s4273_s24 + $0x44] ss:$16 sps:$4 sm:$0xff]  }
 0x69d   : > { %v2042_v27 = vpack.i.b16 %v2041_v23, %v2040_v21  ;;  %v2069_v60 = vcombine.low %v2018_v17, %v2034_v22  ;;  %v2051_v28 = vrot.slane %v2044_v24, %v4405_v3  ;;  %v3645_v50 = vld [vmem:[%s4273_s24 + $0x4c] ss:$16 sps:$4 sm:$0xff]   ;;  %v3640_v14 = vld [vmem:[%s4273_s24 + $0x40] ss:$16 sps:$4 sm:$0xff]   ;;  %v3643_v15 = vld [vmem:[%s4273_s24 + $0x48] ss:$16 sps:$4 sm:$0xff]  }
 0x69e   : > { %v2059_v29 = vrot.slane %v2052_v25, %v4405_v3  ;;  %v3648_v19 = vld [vmem:[%s4273_s24 + $0x64] ss:$16 sps:$4 sm:$0xff]   ;;  %v3651_v20 = vld [vmem:[%s4273_s24 + $0x6c] ss:$16 sps:$4 sm:$0xff]   ;;  %v3646_v21 = vld [vmem:[%s4273_s24 + $0x60] ss:$16 sps:$4 sm:$0xff]  }
 0x69f   : > { %v2077_v30 = vcombine.low %v2026_v58, %v2042_v27  ;;  %v2076_v33 = vrot.slane %v2069_v60, %v4405_v3  ;;  %v3649_v22 = vld [vmem:[%s4273_s24 + $0x68] ss:$16 sps:$4 sm:$0xff]   ;;  %v3654_v23 = vld [vmem:[%s4273_s24 + $0x84] ss:$16 sps:$4 sm:$0xff]   ;;  %v3657_v24 = vld [vmem:[%s4273_s24 + $0x8c] ss:$16 sps:$4 sm:$0xff]  }
 0x6a0   : > { %v2060_v32 = vcombine.low %v2051_v28, %v2059_v29  ;;  %v3652_v58 = vld [vmem:[%s4273_s24 + $0x80] ss:$16 sps:$4 sm:$0xff]   ;;  %v3655_v25 = vld [vmem:[%s4273_s24 + $0x88] ss:$16 sps:$4 sm:$0xff]   ;;  %v3660_v27 = vld [vmem:[%s4273_s24 + $0xa4] ss:$16 sps:$4 sm:$0xff]  }
 0x6a1   : > { %v2084_v34 = vrot.slane %v2077_v30, %v4405_v3  ;;  %v3663_v60 = vld [vmem:[%s4273_s24 + $0xac] ss:$16 sps:$4 sm:$0xff]   ;;  %v3658_v28 = vld [vmem:[%s4273_s24 + $0xa0] ss:$16 sps:$4 sm:$0xff]   ;;  %v3661_v29 = vld [vmem:[%s4273_s24 + $0xa8] ss:$16 sps:$4 sm:$0xff]  }
 0x6a2   : > { %v2067_v36 = vrot.slane %v2060_v32, %v4408_v7  ;;  %v3666_v30 = vld [vmem:[%s4273_s24 + $0xc4] ss:$16 sps:$4 sm:$0xff]   ;;  %v3664_v32 = vld [vmem:[%s4273_s24 + $0xc0] ss:$16 sps:$4 sm:$0xff]   ;;  %v3692_v8 = vld [vmem:[%s4773_s5 + $0x60] sm:$0xff]  }
 0x6a3   : > { %v2085_v37 = vcombine.low %v2076_v33, %v2084_v34  ;;  %v3667_v33 = vld [vmem:[%s4273_s24 + $0xc8] ss:$16 sps:$4 sm:$0xff]   ;;  %v3672_v34 = vld [vmem:[%s4273_s24 + $0xe4] ss:$16 sps:$4 sm:$0xff]  }
 0x6a4   : > { %v2068_v39 = vcombine.high %v2067_v36, %v3952_v26  ;;  %v2097_v40 = vshrl.u32 %v2067_v36, 16  ;;  %v3690_v5 = vld [vmem:[%s4773_s5 + $0x18] sm:$0xff]  }
 0x6a5   : > { %v2092_v38 = vrot.slane %v2085_v37, %v4408_v7  ;;  %v3670_v37 = vld [vmem:[%s4273_s24 + $0xe0] ss:$16 sps:$4 sm:$0xff]  }
 0x6a6   : > { %v2103_v49 = vshrl.u32 %v2068_v39, 16 }
 0x6a7   : > { %v2098_v41 = vshrl.u32 %v2092_v38, 16  ;;  %v2093_v42 = vcombine.high %v2092_v38, %v3952_v26  ;;  %v2096_v46 = vpack.i.b16 %v2092_v38, %v2067_v36  ;;  %v3675_v36 = vld [vmem:[%s4273_s24 + $0xec] ss:$16 sps:$4 sm:$0xff]   ;;  %v3673_v38 = vld [vmem:[%s4273_s24 + $0xe8] ss:$16 sps:$4 sm:$0xff]  }
 0x6a9   : > { %v2099_v48 = vpack.i.b16 %v2098_v41, %v2097_v40  ;;  %v2102_v51 = vpack.i.b16 %v2093_v42, %v2068_v39  ;;  %v2104_v52 = vshrl.u32 %v2093_v42, 16 }
 0x6ab   : > { %2106 = vrot.lane.b32.xlu0 %v2099_v48, %s3954_s0  ;;  %2108 = vrot.lane.b32.xlu1 %v2102_v51, %s3956_s3  ;;  %v2105_v3 = vpack.i.b16 %v2104_v52, %v2103_v49  ;;  %v3242_v51 = vld [vmem:[%s711_s26] ss:$0 sm:$0xff] }
 0x6af   : > { %2110 = vrot.lane.b32.xlu0 %v2105_v3, %s3955_s17 }
 0x71d   : > { %v2107_v7 = vpop.permute.xlu0 %2106  ;;  %v2109_v53 = vpop.permute.xlu1 %2108 }
 0x71e   : > { %v2114_v4 = vsel %vm1525_vm1, %v2096_v46, %v2107_v7  ;;  %v3241_v46 = vld [vmem:[%s4774_s22] ss:$0 sm:$0xff] }
 0x71f   : > { %v2117_v54 = vsel %vm2115_vm4, %v2114_v4, %v2109_v53  ;;  %v3676_v7 = vld [vmem:[%s4773_s5 + $0x40] sm:$0xff]  }
 0x720   : > { %v3677_v4 = vld [vmem:[%s4773_s5 + $0xc0] sm:$0xff]  }
 0x721   : > { %v2111_v55 = vpop.permute.xlu0 %2110  ;;  %v3678_v53 = vld [vmem:[%s4773_s5] sm:$0xff]  }
 0x722   : > { %v2120_v56 = vsel %vm2118_vm5, %v2117_v54, %v2111_v55  ;;  %v3679_v54 = vld [vmem:[%s4773_s5 + $0x80] sm:$0xff]   ;;  %v3680_v55 = vld [vmem:[%s4773_s5 + $0x48] sm:$0xff]  }
 0x723   : > { %3481 = vmatmul.mubr.bf16.vlgmr.msra.gmra.mrb[12].mxu0 %v2120_v56  ;;  %v3681_v56 = vld [vmem:[%s4773_s5 + $0xc8] sm:$0xff]  }
 0x724   : > { %2549 = vmatprep.mubr.bf16.mxu0 %v3952_v26  ;;  %v3628_v26 = vld [vmem:[%s4273_s24] ss:$16 sps:$4 sm:$0xff]   ;;  %2518 = vmatpush1.bf16.msra.mxu0 %v3631_v6 }
 0x725   : > { %2477 = vmatpush1.bf16.msra.mxu1 %v3628_v26  ;;  %2519 = vmatprep.subr.bf16.mxu0 %v3639_v10  ;;  %v3689_v26 = vld [vmem:[%s4773_s5 + $0xd8] sm:$0xff]   ;;  %v3694_v10 = vld [vmem:[%s4773_s5 + $0x20] sm:$0xff]  }
 0x726   : > { %2478 = vmatprep.subr.bf16.mxu1 %v3636_v9  ;;  %v3691_v6 = vld [vmem:[%s4773_s5 + $0x98] sm:$0xff]   ;;  %v3693_v9 = vld [vmem:[%s4773_s5 + $0xe0] sm:$0xff]  }
 0x728   : > { %2520 = vmatpush1.bf16.msra.mxu0 %v3637_v12  ;;  %v3696_v12 = vld [vmem:[%s4773_s5 + $0x68] sm:$0xff]  }
 0x729   : > { %2479 = vmatpush1.bf16.msra.mxu1 %v3634_v11  ;;  %2521 = vmatprep.subr.bf16.mxu0 %v3645_v50  ;;  %v3695_v11 = vld [vmem:[%s4773_s5 + $0xa0] sm:$0xff]   ;;  %v3698_v50 = vld [vmem:[%s4773_s5 + $0x28] sm:$0xff]  }
 0x72a   : > { %2480 = vmatprep.subr.bf16.mxu1 %v3642_v13  ;;  %v3697_v13 = vld [vmem:[%s4773_s5 + $0xe8] sm:$0xff]  }
 0x72c   : > { %2522 = vmatpush1.bf16.msra.mxu0 %v3643_v15  ;;  %v3700_v15 = vld [vmem:[%s4773_s5 + $0x70] sm:$0xff]  }
 0x72d   : > { %2481 = vmatpush1.bf16.msra.mxu1 %v3640_v14  ;;  %2523 = vmatprep.subr.bf16.mxu0 %v3651_v20  ;;  %v3699_v14 = vld [vmem:[%s4773_s5 + $0xa8] sm:$0xff]   ;;  %v3706_v20 = vld [vmem:[%s4773_s5 + $0x38] sm:$0xff]  }
 0x72e   : > { %2482 = vmatprep.subr.bf16.mxu1 %v3648_v19  ;;  %v3705_v19 = vld [vmem:[%s4773_s5 + $0xf8] sm:$0xff]  }
 0x730   : > { %2524 = vmatpush1.bf16.msra.mxu0 %v3649_v22  ;;  %v2294_v22 = vld [vmem:[%s4324_s6] sm:$0xf] }
 0x731   : > { %2483 = vmatpush1.bf16.msra.mxu1 %v3646_v21  ;;  %2525 = vmatprep.subr.bf16.mxu0 %v3657_v24  ;;  %v3707_v21 = vld [vmem:[%s4773_s5 + $0xb8] sm:$0xff]   ;;  %v2299_v24 = vrot.slane %v2294_v22, %v796_v47 }
 0x732   : > { %2484 = vmatprep.subr.bf16.mxu1 %v3654_v23  ;;  %v2310_v23 = vsub.s32 3, %v4383_v43 }
 0x734   : > { %2526 = vmatpush1.bf16.msra.mxu0 %v3655_v25  ;;  %v2303_v25 = vrot.slane %v2294_v22, %v800_v44 }
 0x735   : > { %2485 = vmatpush1.bf16.msra.mxu1 %v3652_v58  ;;  %2527 = vmatprep.subr.bf16.mxu0 %v3663_v60  ;;  %v2307_v58 = vrot.slane %v2294_v22, %v804_v35 }
 0x736   : > { %2486 = vmatprep.subr.bf16.mxu1 %v3660_v27  ;;  %v2311_v27 = vrot.slane %v2294_v22, %v2310_v23 }
 0x738   : > { %2528 = vmatpush1.bf16.msra.mxu0 %v3661_v29 }
 0x739   : > { %2487 = vmatpush1.bf16.msra.mxu1 %v3658_v28  ;;  %2529 = vmatprep.subr.bf16.mxu0 %v3669_v31 }
 0x73a   : > { %2488 = vmatprep.subr.bf16.mxu1 %v3666_v30 }
 0x73c   : > { %2530 = vmatpush1.bf16.msra.mxu0 %v3667_v33 }
 0x73d   : > { %2489 = vmatpush1.bf16.msra.mxu1 %v3664_v32  ;;  %2531 = vmatprep.subr.bf16.mxu0 %v3675_v36 }
 0x73e   : > { %2490 = vmatprep.subr.bf16.mxu1 %v3672_v34 }
 0x740   : > { %2532 = vmatpush1.bf16.msra.mxu0 %v3673_v38 }
 0x741   : > { %2491 = vmatpush1.bf16.msra.mxu1 %v3670_v37  ;;  %3374 = vmatprep.subr.bf16.mxu0 %v3677_v4 }
 0x742   : > { %3352 = vmatprep.subr.bf16.mxu1 %v3676_v7 }
 0x7f6   : > { %v2227_v59 = vpop.f32.mrb[12].mxu0 }
 0x7f7   : > { %v2228_v61 = vadd.f32 %v3232_v57, %v2227_v59  ;;  %v3482_v62 = vpop.f32.mrb[13].mxu0  ;;  %v3682_v57 = vld [vmem:[%s4773_s5 + $0x8] sm:$0xff]  }
 0x7f8   : > { %v2230_v63 = vpop.f32.mrb[14].mxu0  ;;  %v3683_v59 = vld [vmem:[%s4773_s5 + $0x88] sm:$0xff]   ;;  %v3685_v62 = vld [vmem:[%s4773_s5 + $0xd0] sm:$0xff]  }
 0x7f9   : > { %v4585_v1 = vadd.f32 %v3744_v0, %v2228_v61  ;;  %v3483_v2 = vpop.f32.mrb[15].mxu0  ;;  %v3684_v61 = vld [vmem:[%s4773_s5 + $0x50] sm:$0xff]  }
 0x7fa   : > { %v3686_v63 = vld [vmem:[%s4773_s5 + $0x10] sm:$0xff]   ;;  %v3688_v2 = vld [vmem:[%s4773_s5 + $0x58] sm:$0xff]  }
 0x7fb   : > { %2236 = vadd.xlane.f32.xlu1 %v4585_v1  ;;  %v3687_v0 = vld [vmem:[%s4773_s5 + $0x90] sm:$0xff]  }
 0x888   : > { %v2237_v45 = vpop.xlane.xlu1 %2236 }
 0x889   : > { %v2238_v16 = vmul.f32 0.0078125, %v2237_v45  ;;  %v3701_v45 = vld [vmem:[%s4773_s5 + $0xf0] sm:$0xff]  }
 0x88b   : > { %v2239_v17 = vsub.f32 %v4585_v1, %v2238_v16  ;;  %v3702_v16 = vld [vmem:[%s4773_s5 + $0x30] sm:$0xff]  }
 0x88d   : > { %v2240_v18 = vmul.f32 %v2239_v17, %v2239_v17 }
 0x88f   : > { %2241 = vadd.xlane.f32.xlu0 %v2240_v18  ;;  %v3704_v18 = vld [vmem:[%s4773_s5 + $0x78] sm:$0xff]  }
 0x91c   : > { %v2242_v39 = vpop.xlane.xlu0 %2241 }
 0x91d   : > { %v2243_v40 = vmul.f32 0.0078125, %v2242_v39 }
 0x91f   : > { %v2244_v41 = vadd.f32 1e-05, %v2243_v40 }
 0x921   : > { %3726 = vrsqrt.f32 %v2244_v41 }
 0x92b   : > { %v3727_v42 = vpop.eup %3726 }
 0x92c   : > { %v2246_v48 = vmul.f32 %v3727_v42, %v2239_v17  ;;  %v3703_v17 = vld [vmem:[%s4773_s5 + $0xb0] sm:$0xff]  }
 0x92e   : > { %v2253_v49 = vmul.f32 %v3241_v46, %v2246_v48 }
 0x930   : > { %v2260_v52 = vadd.f32 %v3242_v51, %v2253_v49 }
 0x932   : > { %v2261_v3 = vpack.c.bf16 %v2260_v52, %v2260_v52 }
 0x934   : > { %2509 = vmatmul.mubr.bf16.vlgmr.msra.gmra.mrb[28].mxu1 %v2261_v3  ;;  %2550 = vmatmul.mubr.bf16.vlgmr.msra.gmra.mrb[16].mxu0 %v2261_v3 }
 0x935   : > { %3353 = vmatpush3.bf16.msra.mxu1 %v3678_v53  ;;  %3375 = vmatpush3.bf16.msra.mxu0 %v3679_v54 }
 0x936   : > { %3354 = vmatprep.subr.bf16.mxu1 %v3680_v55  ;;  %3376 = vmatprep.subr.bf16.mxu0 %v3681_v56 }
 0x939   : > { %3355 = vmatpush3.bf16.msra.mxu1 %v3682_v57  ;;  %3377 = vmatpush3.bf16.msra.mxu0 %v3683_v59 }
 0x93a   : > { %3356 = vmatprep.subr.bf16.mxu1 %v3684_v61  ;;  %3378 = vmatprep.subr.bf16.mxu0 %v3685_v62 }
 0x93d   : > { %3357 = vmatpush3.bf16.msra.mxu1 %v3686_v63  ;;  %3379 = vmatpush3.bf16.msra.mxu0 %v3687_v0 }
 0x93e   : > { %3358 = vmatprep.subr.bf16.mxu1 %v3688_v2  ;;  %3380 = vmatprep.subr.bf16.mxu0 %v3689_v26 }
 0x941   : > { %3359 = vmatpush3.bf16.msra.mxu1 %v3690_v5  ;;  %3381 = vmatpush3.bf16.msra.mxu0 %v3691_v6 }
 0x942   : > { %3360 = vmatprep.subr.bf16.mxu1 %v3692_v8  ;;  %3382 = vmatprep.subr.bf16.mxu0 %v3693_v9  ;;  %v3279_v9 = vld [vmem:[%s718_s16] ss:$0 sm:$0xff] }
 0x945   : > { %3361 = vmatpush3.bf16.msra.mxu1 %v3694_v10  ;;  %3383 = vmatpush3.bf16.msra.mxu0 %v3695_v11 }
 0x946   : > { %3362 = vmatprep.subr.bf16.mxu1 %v3696_v12  ;;  %3384 = vmatprep.subr.bf16.mxu0 %v3697_v13 }
 0x949   : > { %3363 = vmatpush3.bf16.msra.mxu1 %v3698_v50  ;;  %3385 = vmatpush3.bf16.msra.mxu0 %v3699_v14 }
 0x94a   : > { %3364 = vmatprep.subr.bf16.mxu1 %v3700_v15  ;;  %3386 = vmatprep.subr.bf16.mxu0 %v3701_v45 }
 0x94d   : > { %3365 = vmatpush3.bf16.msra.mxu1 %v3702_v16  ;;  %3387 = vmatpush3.bf16.msra.mxu0 %v3703_v17 }
 0x94e   : > { %3366 = vmatprep.subr.bf16.mxu1 %v3704_v18  ;;  %3388 = vmatprep.subr.bf16.mxu0 %v3705_v19 }
 0x951   : > { %3367 = vmatpush3.bf16.msra.mxu1 %v3706_v20  ;;  %3389 = vmatpush3.bf16.msra.mxu0 %v3707_v21 }
 0xa07   : > { %v2510_v60 = vpop.f32.mrb[28].mxu1  ;;  %v2551_v28 = vpop.f32.mrb[16].mxu0 }
 0xa08   : > { %v2511_v29 = vadd.f32 %v2510_v60, %v2299_v24  ;;  %v2552_v30 = vadd.f32 %v2551_v28, %v2307_v58  ;;  %v2512_v31 = vpop.f32.mrb[29].mxu1  ;;  %v2553_v32 = vpop.f32.mrb[17].mxu0 }
 0xa09   : > { %v2513_v33 = vadd.f32 %v2512_v31, %v2303_v25  ;;  %v2554_v34 = vadd.f32 %v2553_v32, %v2311_v27  ;;  %v2514_v36 = vpop.f32.mrb[30].mxu1  ;;  %v2555_v37 = vpop.f32.mrb[18].mxu0 }
 0xa0a   : > { %v3275_v38 = vmul.f32 -1.702, %v2511_v29  ;;  %v3277_v39 = vmul.f32 -1.702, %v2552_v30  ;;  %v2515_v47 = vpop.f32.mrb[31].mxu1  ;;  %v2556_v40 = vpop.f32.mrb[19].mxu0 }
 0xa0b   : > { %v3276_v41 = vmul.f32 -1.702, %v2513_v33  ;;  %v3278_v35 = vmul.f32 -1.702, %v2554_v34 }
 0xa0c   : > { %v2566_v42 = vmul.f32 1.442695, %v3275_v38  ;;  %v2570_v43 = vmul.f32 1.442695, %v3277_v39 }
 0xa0d   : > { %v2568_v44 = vmul.f32 1.442695, %v3276_v41  ;;  %v2572_v46 = vmul.f32 1.442695, %v3278_v35 }
 0xa0e   : > { %3728 = vpow2.f32 %v2566_v42 }
 0xa0f   : > { %3730 = vpow2.f32 %v2570_v43 }
 0xa10   : > { %3732 = vpow2.f32 %v2568_v44 }
 0xa11   : > { %3734 = vpow2.f32 %v2572_v46 }
 0xa18   : > { %v3729_v48 = vpop.eup %3728 }
 0xa19   : > { %v3731_v51 = vpop.eup %3730  ;;  %v2574_v49 = vadd.f32 1.0, %v3729_v48 }
 0xa1a   : > { %v3733_v52 = vpop.eup %3732  ;;  %v2576_v3 = vadd.f32 1.0, %v3731_v51 }
 0xa1b   : > { %v3735_v7 = vpop.eup %3734  ;;  %3736 = vrcp.f32 %v2574_v49  ;;  %v2575_v4 = vadd.f32 1.0, %v3733_v52 }
 0xa1c   : > { %3738 = vrcp.f32 %v2576_v3  ;;  %v2577_v53 = vadd.f32 1.0, %v3735_v7 }
 0xa1d   : > { %3740 = vrcp.f32 %v2575_v4 }
 0xa1e   : > { %3742 = vrcp.f32 %v2577_v53 }
 0xa25   : > { %v3737_v54 = vpop.eup %3736 }
 0xa26   : > { %v3739_v55 = vpop.eup %3738  ;;  %v2586_v57 = vmul.f32 %v3737_v54, %v2511_v29 }
 0xa27   : > { %v3741_v56 = vpop.eup %3740  ;;  %v2588_v61 = vmul.f32 %v3739_v55, %v2552_v30 }
 0xa28   : > { %v3743_v59 = vpop.eup %3742  ;;  %v2587_v62 = vmul.f32 %v3741_v56, %v2513_v33  ;;  %v2590_v2 = vpack.c.bf16 %v2586_v57, %v2586_v57 }
 0xa29   : > { %v2589_v63 = vmul.f32 %v3743_v59, %v2554_v34  ;;  %v2592_v5 = vpack.c.bf16 %v2588_v61, %v2588_v61 }
 0xa2a   : > { %v2591_v0 = vpack.c.bf16 %v2587_v62, %v2587_v62 }
 0xa2b   : > { %v2593_v26 = vpack.c.bf16 %v2589_v63, %v2589_v63 }
 0xa2c   : > { %2889 = vmatprep.mubr.bf16.mxu1 %v2591_v0 }
 0xa2d   : > { %2929 = vmatprep.mubr.bf16.mxu0 %v2593_v26  ;;  %2890 = vmatmul.mubr.bf16.vlgmr.msra.gmra.mrb[32].mxu1 %v2590_v2 }
 0xa2e   : > { %2930 = vmatmul.mubr.bf16.vlgmr.msra.gmra.mrb[20].mxu0 %v2592_v5 }
 0xb00   : > { %v3368_v6 = vpop.f32.mrb[32].mxu1 }
 0xb01   : > { %v3390_v8 = vpop.f32.mrb[20].mxu0  ;;  %v3369_v10 = vpop.f32.mrb[33].mxu1 }
 0xb02   : > { %v3370_v11 = vadd.f32 %v3369_v10, %v3368_v6  ;;  %v3391_v12 = vpop.f32.mrb[21].mxu0  ;;  %v3371_v13 = vpop.f32.mrb[34].mxu1 }
 0xb03   : > { %v3392_v50 = vadd.f32 %v3391_v12, %v3390_v8  ;;  %v3393_v14 = vpop.f32.mrb[22].mxu0  ;;  %v3372_v15 = vpop.f32.mrb[35].mxu1 }
 0xb04   : > { %v2892_v45 = vadd.f32 %v3370_v11, %v3279_v9  ;;  %v3394_v16 = vpop.f32.mrb[23].mxu0  ;;  %2942 = sbr.rel (%p3312_p8) target bundleno = 2827 (0xb0b), region = 96 }
 0xb06   : > { %v2932_v17 = vadd.f32 %v3392_v50, %v2892_v45 }
 0xb08   : > { %v2937_v18 = vadd.f32 %v2932_v17, %v4585_v1 }
 0xb0a   : > { %2938 = vst [vmem:[#allocation2] sm:$0xff] %v2937_v18  ;;  %2943 = vst [vmem:[%s4329_s30] sm:$0xff] (!%p3312_p8), %v2937_v18 }
 0xb0b PF: > { %s4777_s16 = sld [smem:[#allocation17_spill]]  ;;  %s4778_s25 = sld [smem:[#allocation13_spill]] }
 0xb0c   : > { %s4779_s26 = sld [smem:[#allocation14_spill]]  ;;  %s4780_s27 = sld [smem:[#allocation20_spill]] }
 0xb0d   : > { %s4781_s28 = sld [smem:[#allocation15_spill]]  ;;  %s4782_s29 = sld [smem:[#allocation16_spill]] }
 0xb0e   : > { %s4783_s30 = sld [smem:[#allocation18_spill]]  ;;  %s4784_s14 = sld [smem:[#allocation19_spill]] }
 0xb11   : > { %s32_s15 = sadd.s32 1, %s4777_s16  }
 0xb12   : > { %p29_p1 = scmp.ge.s32.totalorder %s32_s15, 6  }
 0xb14   :  { %31 = sbr.rel (!%p29_p1) target bundleno = 21 (0x15), region = 184 }
 0xb1b   :  { %2963 = vsyncpa [#allocation4], 1 }
 0xb1c   :  { %2965 = vsyncpa [#allocation4 + $0x1], 1 }
 0xb1d   :  { %2966 = vsyncpa [#allocation6], 1 }
 0xb1e   :  { %2968 = vsyncpa [#allocation6 + $0x1], 1 }
 0xb1f   :  { %2969 = vsyncpa [#allocation9], 1 }
 0xb20   :  { %2971 = vsyncpa [#allocation9 + $0x1], 1 }

</bundles_post_ra>
